<compile_context>
chip_gen: v6e
topology: v6e:2x2x1
jax: 0.10.0
libtpu: 0.0.40
codegen_flags: <defaults>
</compile_context>

<pallas_src>
import jax
import jax.numpy as jnp
from jax import lax
from jax.experimental import pallas as pl
from jax.experimental.pallas import tpu as pltpu

# ----------------------------------------------------------------------------
# LeNet geometry (fixed by the reference module: 3 x 32 x 32 input).
# ----------------------------------------------------------------------------
IN_C, IN_H, IN_W = 3, 32, 32
K = 5                                   # conv kernel size
C1_OUT, C1_OH, C1_OW = 6, 28, 28        # conv1 output
P1_H, P1_W = 14, 14                     # pool1 output
C2_OUT, C2_OH, C2_OW = 16, 10, 10       # conv2 output
P2_H, P2_W = 5, 5                       # pool2 output
FC1_OUT, FC2_OUT = 120, 84
FC_CHUNK = C2_OUT * P2_W                # 80 lanes per pooled row
FC1_IN = P2_H * FC_CHUNK                # 400 flattened features
B_TILE_MAX = 32                         # samples per grid step (divisible by 8)


# ----------------------------------------------------------------------------
# In-kernel helpers
# ----------------------------------------------------------------------------
def _pool2x2(y, rsel, csel):
    """2x2/stride-2 max pool of y laid out (oh, oc*ow) using precomputed
    0/1 selection matrices (rsel: rows, csel: columns)."""
    f32 = jnp.float32
    m = jnp.maximum(jnp.maximum(y[:-1, :-1], y[1:, :-1]),
                    jnp.maximum(y[:-1, 1:], y[1:, 1:]))     # (oh-1, oc*ow-1)
    pooled = jnp.dot(m, csel, preferred_element_type=f32)   # (oh-1, oc*owp)
    return jnp.dot(rsel, pooled, preferred_element_type=f32)  # (ohp, oc*owp)


def _lenet_kernel(x_ref, cb1_ref, bias1_ref, rsel1_ref, csel1_ref,
                  cb2_ref, bias2_ref, rsel2_ref, csel2_ref,
                  fw1_ref, fb1_ref, fw2_ref, fb2_ref, fw3_ref, fb3_ref,
                  out_ref, p2_ref):
    """One grid step == B_TILE samples.  All intermediates stay on-chip."""
    f32 = jnp.float32
    bt = out_ref.shape[0]

    # Grid-invariant small operands, loaded once per grid step.
    bias1 = bias1_ref[...]                                   # (1, 168)
    bias2 = bias2_ref[...]                                   # (1, 160)
    rsel1 = rsel1_ref[...]; csel1 = csel1_ref[...]
    rsel2 = rsel2_ref[...]; csel2 = csel2_ref[...]

    def per_sample(s, carry):
        base = pl.multiple_of(s * IN_H, IN_H)

        # ---- conv1: 5 matmuls (28, 96) @ (96, 168), K folded over channels --
        acc1 = jnp.zeros((C1_OH, C1_OUT * C1_OW), f32)
        for dh in range(K):
            rows = x_ref[pl.ds(base + dh, C1_OH), :]          # (28, 96)
            acc1 = acc1 + jnp.dot(rows, cb1_ref[dh],
                                  preferred_element_type=f32)
        acc1 = acc1 + bias1
        p1 = _pool2x2(acc1, rsel1, csel1)                     # (14, 6*14)

        # ---- conv2: 5 matmuls (10, 84) @ (84, 160) --------------------------
        acc2 = jnp.zeros((C2_OH, C2_OUT * C2_OW), f32)
        for dh in range(K):
            acc2 = acc2 + jnp.dot(p1[dh:dh + C2_OH, :], cb2_ref[dh],
                                  preferred_element_type=f32)
        acc2 = acc2 + bias2
        p2 = _pool2x2(acc2, rsel2, csel2)                     # (5, 16*5)

        # Flatten (5, 80) -> (1, 400) and stash for the batched classifier.
        row = jnp.concatenate([p2[y:y + 1, :] for y in range(P2_H)], axis=1)
        p2_ref[pl.ds(s, 1), :] = row
        return carry

    lax.fori_loop(0, bt, per_sample, 0)

    # ---- classifier, batched over the sample tile ---------------------------
    feats = p2_ref[...]                                       # (bt, 400)
    h = jnp.dot(feats, fw1_ref[...], preferred_element_type=f32) + fb1_ref[...]
    h = jnp.dot(h, fw2_ref[...], preferred_element_type=f32) + fb2_ref[...]
    h = jnp.dot(h, fw3_ref[...], preferred_element_type=f32) + fb3_ref[...]
    out_ref[...] = h                                          # (bt, nc)


# ----------------------------------------------------------------------------
# One-time weight re-layout (outside the hot path)
# ----------------------------------------------------------------------------
def _conv_as_toeplitz(w, w_in):
    """(OC, C, KH, KW) conv weight -> (KH, C*W_in, OC*OW) stacked matrices.

    B[kh, c*W_in + w, oc*OW + ow] = w[oc, c, kh, w-ow] for 0 <= w-ow < KW.
    """
    oc, c, kh, kw = w.shape
    ow = w_in - kw + 1
    wi = jnp.arange(w_in)
    ov = jnp.arange(ow)
    kk = jnp.arange(kw)
    sel = (wi[None, :, None] == (ov[None, None, :] + kk[:, None, None])
           ).astype(jnp.float32)                              # (KW, W_in, OW)
    b = jnp.einsum('ochk,kwv->hcwov', w.astype(jnp.float32), sel)
    return b.reshape(kh, c * w_in, oc * ow)


def _pool_selectors(oh, ow, oc):
    """Precomputed 0/1 selection matrices for the in-kernel 2x2 pool."""
    f32 = jnp.float32
    ohp, owp = oh // 2, ow // 2
    rsel = (2 * jnp.arange(ohp)[:, None] == jnp.arange(oh - 1)[None, :]
            ).astype(f32)                                     # (ohp, oh-1)
    csel = (jnp.arange(oc * ow - 1)[:, None] == 2 * jnp.arange(oc * owp)[None, :]
            ).astype(f32)                                     # (oc*ow-1, oc*owp)
    return rsel, csel


def prepare_params(params):
    """Re-layout PyTorch-style LeNet params into kernel-friendly operands."""
    p = {}
    p["cb1"] = _conv_as_toeplitz(params["conv1_w"], IN_W)     # (5, 96, 168)
    p["bias1"] = jnp.repeat(params["conv1_b"], C1_OW)[None, :]  # (1, 168)
    p["rsel1"], p["csel1"] = _pool_selectors(C1_OH, C1_OW, C1_OUT)
    p["cb2"] = _conv_as_toeplitz(params["conv2_w"], P1_W)     # (5, 84, 160)
    p["bias2"] = jnp.repeat(params["conv2_b"], C2_OW)[None, :]  # (1, 160)
    p["rsel2"], p["csel2"] = _pool_selectors(C2_OH, C2_OW, C2_OUT)
    # fw1[y*80 + c*5 + x, j] = fc1_w[j, c*25 + y*5 + x]  (PyTorch flatten order)
    p["fw1"] = (params["fc1_w"]
                .reshape(FC1_OUT, C2_OUT, P2_H, P2_W)
                .transpose(2, 1, 3, 0)
                .reshape(FC1_IN, FC1_OUT))                    # (400, 120)
    p["fb1"] = params["fc1_b"][None, :]                       # (1, 120)
    p["fw2"] = params["fc2_w"].T                              # (120, 84)
    p["fb2"] = params["fc2_b"][None, :]                       # (1, 84)
    p["fw3"] = params["fc3_w"].T                              # (84, nc)
    p["fb3"] = params["fc3_b"][None, :]                       # (1, nc)
    return p


# ----------------------------------------------------------------------------
# Fused forward
# ----------------------------------------------------------------------------
def _full_spec(a):
    nd = a.ndim
    return pl.BlockSpec(a.shape, lambda i, _nd=nd: (0,) * _nd)


@jax.jit
def lenet_forward(x, prep):
    n = x.shape[0]
    nc = prep["fw3"].shape[1]
    bt = n if n <= B_TILE_MAX else B_TILE_MAX                 # samples / step
    n_pad = ((n + bt - 1) // bt) * bt

    # Per-sample layout: rows (H) on sublanes, channel*width (96) on lanes.
    xt = jnp.transpose(x.astype(jnp.float32), (0, 2, 1, 3)
                       ).reshape(n, IN_H, IN_C * IN_W)
    if n_pad != n:
        pad = jnp.zeros((n_pad - n, IN_H, IN_C * IN_W), jnp.float32)
        xt = jnp.concatenate([xt, pad], axis=0)
    x2d = xt.reshape(n_pad * IN_H, IN_C * IN_W)               # (n_pad*32, 96)

    weight_keys = ("cb1", "bias1", "rsel1", "csel1", "cb2", "bias2",
                   "rsel2", "csel2", "fw1", "fb1", "fw2", "fb2", "fw3", "fb3")
    weights = [prep[k] for k in weight_keys]

    out = pl.pallas_call(
        _lenet_kernel,
        out_shape=jax.ShapeDtypeStruct((n_pad, nc), jnp.float32),
        grid=(n_pad // bt,),
        in_specs=[pl.BlockSpec((bt * IN_H, IN_C * IN_W), lambda i: (i, 0))]
                 + [_full_spec(w) for w in weights],
        out_specs=pl.BlockSpec((bt, nc), lambda i: (i, 0)),
        scratch_shapes=[pltpu.VMEM((bt, FC1_IN), jnp.float32)],
        compiler_params=pltpu.CompilerParams(
            dimension_semantics=("parallel",)),               # tiles -> v7x TCs
    )(x2d, *weights)
    return out[:n]


# ----------------------------------------------------------------------------
# Params + pure-JAX reference (same math) for a sanity check
# ----------------------------------------------------------------------------
def init_params(key, num_classes=10):
    """Deterministic, PyTorch-like uniform(-1/sqrt(fan_in), +1/sqrt(fan_in))."""
    def u(k, shape, fan_in):
        bound = 1.0 / jnp.sqrt(fan_in)
        return jax.random.uniform(k, shape, jnp.float32, -bound, bound)

    ks = jax.random.split(key, 10)
    return {
        "conv1_w": u(ks[0], (6, 3, 5, 5), 3 * 5 * 5),
        "conv1_b": u(ks[1], (6,), 3 * 5 * 5),
        "conv2_w": u(ks[2], (16, 6, 5, 5), 6 * 5 * 5),
        "conv2_b": u(ks[3], (16,), 6 * 5 * 5),
        "fc1_w": u(ks[4], (120, 400), 400),
        "fc1_b": u(ks[5], (120,), 400),
        "fc2_w": u(ks[6], (84, 120), 120),
        "fc2_b": u(ks[7], (84,), 120),
        "fc3_w": u(ks[8], (num_classes, 84), 84),
        "fc3_b": u(ks[9], (num_classes,), 84),
    }


def _ref_forward(x, params):
    dn = jax.lax.conv_dimension_numbers(x.shape, params["conv1_w"].shape,
                                        ("NCHW", "OIHW", "NCHW"))
    x = jax.lax.conv_general_dilated(x, params["conv1_w"], (1, 1), "VALID",
                                     dimension_numbers=dn)
    x = x + params["conv1_b"][None, :, None, None]
    x = jax.lax.reduce_window(x, -jnp.inf, jax.lax.max,
                              (1, 1, 2, 2), (1, 1, 2, 2), "VALID")
    dn = jax.lax.conv_dimension_numbers(x.shape, params["conv2_w"].shape,
                                        ("NCHW", "OIHW", "NCHW"))
    x = jax.lax.conv_general_dilated(x, params["conv2_w"], (1, 1), "VALID",
                                     dimension_numbers=dn)
    x = x + params["conv2_b"][None, :, None, None]
    x = jax.lax.reduce_window(x, -jnp.inf, jax.lax.max,
                              (1, 1, 2, 2), (1, 1, 2, 2), "VALID")
    x = x.reshape(x.shape[0], -1)
    x = x @ params["fc1_w"].T + params["fc1_b"]
    x = x @ params["fc2_w"].T + params["fc2_b"]
    x = x @ params["fc3_w"].T + params["fc3_b"]
    return x


if __name__ == "__main__":
    num_classes = 10
    params = init_params(jax.random.PRNGKey(42), num_classes)

    # one-time weight re-layout, outside the jitted hot path
    prep = prepare_params(params)
    prep = jax.tree_util.tree_map(jax.block_until_ready, prep)

    # Small demo batch (single tile, block == full batch dim).
    x = jax.random.normal(jax.random.PRNGKey(0),
                          (2, IN_C, IN_H, IN_W), dtype=jnp.float32)
    out = jax.block_until_ready(lenet_forward(x, prep))
    assert out.shape == (2, num_classes), out.shape
    ref = jax.block_until_ready(_ref_forward(x, params))
    err = float(jnp.max(jnp.abs(out - ref)))
    assert jnp.allclose(out, ref, atol=1e-2, rtol=1e-2), f"max abs err {err}"

    # Larger batch: exercises B_TILE=32 sample tiling, grid=2 and batch padding.
    xb = jax.random.normal(jax.random.PRNGKey(1),
                           (40, IN_C, IN_H, IN_W), dtype=jnp.float32)
    outb = jax.block_until_ready(lenet_forward(xb, prep))
    assert outb.shape == (40, num_classes), outb.shape
    refb = jax.block_until_ready(_ref_forward(xb, params))
    errb = float(jnp.max(jnp.abs(outb - refb)))
    assert jnp.allclose(outb, refb, atol=1e-2, rtol=1e-2), f"max abs err {errb}"

    print("KERNEL_OK")
</pallas_src>

<mosaic_0001>
module attributes {stable_mosaic.version = 11 : i64} {
  func.func @_lenet_kernel(%arg0: i32, %arg1: memref<64x96xf32, #tpu.memory_space<vmem>>, %arg2: memref<5x96x168xf32, #tpu.memory_space<vmem>>, %arg3: memref<1x168xf32, #tpu.memory_space<vmem>>, %arg4: memref<14x27xf32, #tpu.memory_space<vmem>>, %arg5: memref<167x84xf32, #tpu.memory_space<vmem>>, %arg6: memref<5x84x160xf32, #tpu.memory_space<vmem>>, %arg7: memref<1x160xf32, #tpu.memory_space<vmem>>, %arg8: memref<5x9xf32, #tpu.memory_space<vmem>>, %arg9: memref<159x80xf32, #tpu.memory_space<vmem>>, %arg10: memref<400x120xf32, #tpu.memory_space<vmem>>, %arg11: memref<1x120xf32, #tpu.memory_space<vmem>>, %arg12: memref<120x84xf32, #tpu.memory_space<vmem>>, %arg13: memref<1x84xf32, #tpu.memory_space<vmem>>, %arg14: memref<84x10xf32, #tpu.memory_space<vmem>>, %arg15: memref<1x10xf32, #tpu.memory_space<vmem>>, %arg16: memref<2x10xf32, #tpu.memory_space<vmem>>, %arg17: memref<2x400xf32, #tpu.memory_space<vmem>>) attributes {dimension_semantics = [#tpu.dimension_semantics<parallel>], iteration_bounds = array<i64: 1>, scalar_prefetch = 0 : i64, scratch_operands = 1 : i64, tpu.core_type = #tpu.core_type<tc>, window_params = [{transform_indices = @transform_0, window_bounds = array<i64: 64, 96>}, {pipeline_mode = #tpu.pipeline_mode<synchronous>, transform_indices = @transform_1, window_bounds = array<i64: 5, 96, 168>}, {pipeline_mode = #tpu.pipeline_mode<synchronous>, transform_indices = @transform_2, window_bounds = array<i64: 1, 168>}, {pipeline_mode = #tpu.pipeline_mode<synchronous>, transform_indices = @transform_3, window_bounds = array<i64: 14, 27>}, {pipeline_mode = #tpu.pipeline_mode<synchronous>, transform_indices = @transform_4, window_bounds = array<i64: 167, 84>}, {pipeline_mode = #tpu.pipeline_mode<synchronous>, transform_indices = @transform_5, window_bounds = array<i64: 5, 84, 160>}, {pipeline_mode = #tpu.pipeline_mode<synchronous>, transform_indices = @transform_6, window_bounds = array<i64: 1, 160>}, {pipeline_mode = #tpu.pipeline_mode<synchronous>, transform_indices = @transform_7, window_bounds = array<i64: 5, 9>}, {pipeline_mode = #tpu.pipeline_mode<synchronous>, transform_indices = @transform_8, window_bounds = array<i64: 159, 80>}, {pipeline_mode = #tpu.pipeline_mode<synchronous>, transform_indices = @transform_9, window_bounds = array<i64: 400, 120>}, {pipeline_mode = #tpu.pipeline_mode<synchronous>, transform_indices = @transform_10, window_bounds = array<i64: 1, 120>}, {pipeline_mode = #tpu.pipeline_mode<synchronous>, transform_indices = @transform_11, window_bounds = array<i64: 120, 84>}, {pipeline_mode = #tpu.pipeline_mode<synchronous>, transform_indices = @transform_12, window_bounds = array<i64: 1, 84>}, {pipeline_mode = #tpu.pipeline_mode<synchronous>, transform_indices = @transform_13, window_bounds = array<i64: 84, 10>}, {pipeline_mode = #tpu.pipeline_mode<synchronous>, transform_indices = @transform_14, window_bounds = array<i64: 1, 10>}, {transform_indices = @transform_15, window_bounds = array<i64: 2, 10>}]} {
    %c0 = arith.constant 0 : index
    %c0_0 = arith.constant 0 : index
    %0 = vector.load %arg3[%c0, %c0_0] : memref<1x168xf32, #tpu.memory_space<vmem>>, vector<1x168xf32>
    %c0_1 = arith.constant 0 : index
    %c0_2 = arith.constant 0 : index
    %1 = vector.load %arg7[%c0_1, %c0_2] : memref<1x160xf32, #tpu.memory_space<vmem>>, vector<1x160xf32>
    %c0_3 = arith.constant 0 : index
    %c0_4 = arith.constant 0 : index
    %2 = vector.load %arg4[%c0_3, %c0_4] : memref<14x27xf32, #tpu.memory_space<vmem>>, vector<14x27xf32>
    %c0_5 = arith.constant 0 : index
    %c0_6 = arith.constant 0 : index
    %3 = vector.load %arg5[%c0_5, %c0_6] : memref<167x84xf32, #tpu.memory_space<vmem>>, vector<167x84xf32>
    %c0_7 = arith.constant 0 : index
    %c0_8 = arith.constant 0 : index
    %4 = vector.load %arg8[%c0_7, %c0_8] : memref<5x9xf32, #tpu.memory_space<vmem>>, vector<5x9xf32>
    %c0_9 = arith.constant 0 : index
    %c0_10 = arith.constant 0 : index
    %5 = vector.load %arg9[%c0_9, %c0_10] : memref<159x80xf32, #tpu.memory_space<vmem>>, vector<159x80xf32>
    %c0_i32 = arith.constant 0 : i32
    %c2_i32 = arith.constant 2 : i32
    %6 = arith.addi %c0_i32, %c2_i32 : i32
    %c1_i32 = arith.constant 1 : i32
    scf.for %arg18 = %c0_i32 to %6 step %c1_i32  : i32 {
      %c32_i32 = arith.constant 32 : i32
      %24 = arith.muli %arg18, %c32_i32 : i32
      %25 = tpu.assume_multiple %24, 32 : i32
      %cst_30 = arith.constant 0.000000e+00 : f32
      %26 = vector.broadcast %cst_30 : f32 to vector<28x168xf32>
      %c0_i32_31 = arith.constant 0 : i32
      %27 = arith.addi %25, %c0_i32_31 : i32
      %28 = arith.index_cast %27 : i32 to index
      %c0_32 = arith.constant 0 : index
      %29 = vector.load %arg1[%28, %c0_32] : memref<64x96xf32, #tpu.memory_space<vmem>>, vector<28x96xf32>
      %c0_33 = arith.constant 0 : index
      %c0_34 = arith.constant 0 : index
      %c0_35 = arith.constant 0 : index
      %30 = vector.load %arg2[%c0_33, %c0_34, %c0_35] : memref<5x96x168xf32, #tpu.memory_space<vmem>>, vector<1x96x168xf32>
      %31 = vector.shape_cast %30 : vector<1x96x168xf32> to vector<96x168xf32>
      %cst_36 = arith.constant dense<0.000000e+00> : vector<28x168xf32>
      %32 = tpu.matmul %29, %31, %cst_36 {dimension_numbers = #tpu.dot_dimension_numbers<[1], [0], [0], [1], [0, 0, 1, 1], [], []>} : vector<28x96xf32>, vector<96x168xf32>, vector<28x168xf32> -> vector<28x168xf32>
      %33 = arith.addf %26, %32 : vector<28x168xf32>
      %c1_i32_37 = arith.constant 1 : i32
      %34 = arith.addi %25, %c1_i32_37 : i32
      %35 = arith.index_cast %34 : i32 to index
      %c0_38 = arith.constant 0 : index
      %36 = vector.load %arg1[%35, %c0_38] : memref<64x96xf32, #tpu.memory_space<vmem>>, vector<28x96xf32>
      %c1 = arith.constant 1 : index
      %c0_39 = arith.constant 0 : index
      %c0_40 = arith.constant 0 : index
      %37 = vector.load %arg2[%c1, %c0_39, %c0_40] : memref<5x96x168xf32, #tpu.memory_space<vmem>>, vector<1x96x168xf32>
      %38 = vector.shape_cast %37 : vector<1x96x168xf32> to vector<96x168xf32>
      %cst_41 = arith.constant dense<0.000000e+00> : vector<28x168xf32>
      %39 = tpu.matmul %36, %38, %cst_41 {dimension_numbers = #tpu.dot_dimension_numbers<[1], [0], [0], [1], [0, 0, 1, 1], [], []>} : vector<28x96xf32>, vector<96x168xf32>, vector<28x168xf32> -> vector<28x168xf32>
      %40 = arith.addf %33, %39 : vector<28x168xf32>
      %c2_i32_42 = arith.constant 2 : i32
      %41 = arith.addi %25, %c2_i32_42 : i32
      %42 = arith.index_cast %41 : i32 to index
      %c0_43 = arith.constant 0 : index
      %43 = vector.load %arg1[%42, %c0_43] : memref<64x96xf32, #tpu.memory_space<vmem>>, vector<28x96xf32>
      %c2 = arith.constant 2 : index
      %c0_44 = arith.constant 0 : index
      %c0_45 = arith.constant 0 : index
      %44 = vector.load %arg2[%c2, %c0_44, %c0_45] : memref<5x96x168xf32, #tpu.memory_space<vmem>>, vector<1x96x168xf32>
      %45 = vector.shape_cast %44 : vector<1x96x168xf32> to vector<96x168xf32>
      %cst_46 = arith.constant dense<0.000000e+00> : vector<28x168xf32>
      %46 = tpu.matmul %43, %45, %cst_46 {dimension_numbers = #tpu.dot_dimension_numbers<[1], [0], [0], [1], [0, 0, 1, 1], [], []>} : vector<28x96xf32>, vector<96x168xf32>, vector<28x168xf32> -> vector<28x168xf32>
      %47 = arith.addf %40, %46 : vector<28x168xf32>
      %c3_i32 = arith.constant 3 : i32
      %48 = arith.addi %25, %c3_i32 : i32
      %49 = arith.index_cast %48 : i32 to index
      %c0_47 = arith.constant 0 : index
      %50 = vector.load %arg1[%49, %c0_47] : memref<64x96xf32, #tpu.memory_space<vmem>>, vector<28x96xf32>
      %c3 = arith.constant 3 : index
      %c0_48 = arith.constant 0 : index
      %c0_49 = arith.constant 0 : index
      %51 = vector.load %arg2[%c3, %c0_48, %c0_49] : memref<5x96x168xf32, #tpu.memory_space<vmem>>, vector<1x96x168xf32>
      %52 = vector.shape_cast %51 : vector<1x96x168xf32> to vector<96x168xf32>
      %cst_50 = arith.constant dense<0.000000e+00> : vector<28x168xf32>
      %53 = tpu.matmul %50, %52, %cst_50 {dimension_numbers = #tpu.dot_dimension_numbers<[1], [0], [0], [1], [0, 0, 1, 1], [], []>} : vector<28x96xf32>, vector<96x168xf32>, vector<28x168xf32> -> vector<28x168xf32>
      %54 = arith.addf %47, %53 : vector<28x168xf32>
      %c4_i32 = arith.constant 4 : i32
      %55 = arith.addi %25, %c4_i32 : i32
      %56 = arith.index_cast %55 : i32 to index
      %c0_51 = arith.constant 0 : index
      %57 = vector.load %arg1[%56, %c0_51] : memref<64x96xf32, #tpu.memory_space<vmem>>, vector<28x96xf32>
      %c4 = arith.constant 4 : index
      %c0_52 = arith.constant 0 : index
      %c0_53 = arith.constant 0 : index
      %58 = vector.load %arg2[%c4, %c0_52, %c0_53] : memref<5x96x168xf32, #tpu.memory_space<vmem>>, vector<1x96x168xf32>
      %59 = vector.shape_cast %58 : vector<1x96x168xf32> to vector<96x168xf32>
      %cst_54 = arith.constant dense<0.000000e+00> : vector<28x168xf32>
      %60 = tpu.matmul %57, %59, %cst_54 {dimension_numbers = #tpu.dot_dimension_numbers<[1], [0], [0], [1], [0, 0, 1, 1], [], []>} : vector<28x96xf32>, vector<96x168xf32>, vector<28x168xf32> -> vector<28x168xf32>
      %61 = arith.addf %54, %60 : vector<28x168xf32>
      %62 = vector.broadcast %0 : vector<1x168xf32> to vector<28x168xf32>
      %63 = arith.addf %61, %62 : vector<28x168xf32>
      %64 = vector.extract_strided_slice %63 {offsets = [0, 0], sizes = [27, 167], strides = [1, 1]} : vector<28x168xf32> to vector<27x167xf32>
      %65 = vector.extract_strided_slice %63 {offsets = [1, 0], sizes = [27, 167], strides = [1, 1]} : vector<28x168xf32> to vector<27x167xf32>
      %66 = arith.maximumf %64, %65 : vector<27x167xf32>
      %67 = vector.extract_strided_slice %63 {offsets = [0, 1], sizes = [27, 167], strides = [1, 1]} : vector<28x168xf32> to vector<27x167xf32>
      %68 = vector.extract_strided_slice %63 {offsets = [1, 1], sizes = [27, 167], strides = [1, 1]} : vector<28x168xf32> to vector<27x167xf32>
      %69 = arith.maximumf %67, %68 : vector<27x167xf32>
      %70 = arith.maximumf %66, %69 : vector<27x167xf32>
      %cst_55 = arith.constant dense<0.000000e+00> : vector<27x84xf32>
      %71 = tpu.matmul %70, %3, %cst_55 {dimension_numbers = #tpu.dot_dimension_numbers<[1], [0], [0], [1], [0, 0, 1, 1], [], []>} : vector<27x167xf32>, vector<167x84xf32>, vector<27x84xf32> -> vector<27x84xf32>
      %cst_56 = arith.constant dense<0.000000e+00> : vector<14x84xf32>
      %72 = tpu.matmul %2, %71, %cst_56 {dimension_numbers = #tpu.dot_dimension_numbers<[1], [0], [0], [1], [0, 0, 1, 1], [], []>} : vector<14x27xf32>, vector<27x84xf32>, vector<14x84xf32> -> vector<14x84xf32>
      %cst_57 = arith.constant 0.000000e+00 : f32
      %73 = vector.broadcast %cst_57 : f32 to vector<10x160xf32>
      %74 = vector.extract_strided_slice %72 {offsets = [0, 0], sizes = [10, 84], strides = [1, 1]} : vector<14x84xf32> to vector<10x84xf32>
      %c0_58 = arith.constant 0 : index
      %c0_59 = arith.constant 0 : index
      %c0_60 = arith.constant 0 : index
      %75 = vector.load %arg6[%c0_58, %c0_59, %c0_60] : memref<5x84x160xf32, #tpu.memory_space<vmem>>, vector<1x84x160xf32>
      %76 = vector.shape_cast %75 : vector<1x84x160xf32> to vector<84x160xf32>
      %cst_61 = arith.constant dense<0.000000e+00> : vector<10x160xf32>
      %77 = tpu.matmul %74, %76, %cst_61 {dimension_numbers = #tpu.dot_dimension_numbers<[1], [0], [0], [1], [0, 0, 1, 1], [], []>} : vector<10x84xf32>, vector<84x160xf32>, vector<10x160xf32> -> vector<10x160xf32>
      %78 = arith.addf %73, %77 : vector<10x160xf32>
      %79 = vector.extract_strided_slice %72 {offsets = [1, 0], sizes = [10, 84], strides = [1, 1]} : vector<14x84xf32> to vector<10x84xf32>
      %c1_62 = arith.constant 1 : index
      %c0_63 = arith.constant 0 : index
      %c0_64 = arith.constant 0 : index
      %80 = vector.load %arg6[%c1_62, %c0_63, %c0_64] : memref<5x84x160xf32, #tpu.memory_space<vmem>>, vector<1x84x160xf32>
      %81 = vector.shape_cast %80 : vector<1x84x160xf32> to vector<84x160xf32>
      %cst_65 = arith.constant dense<0.000000e+00> : vector<10x160xf32>
      %82 = tpu.matmul %79, %81, %cst_65 {dimension_numbers = #tpu.dot_dimension_numbers<[1], [0], [0], [1], [0, 0, 1, 1], [], []>} : vector<10x84xf32>, vector<84x160xf32>, vector<10x160xf32> -> vector<10x160xf32>
      %83 = arith.addf %78, %82 : vector<10x160xf32>
      %84 = vector.extract_strided_slice %72 {offsets = [2, 0], sizes = [10, 84], strides = [1, 1]} : vector<14x84xf32> to vector<10x84xf32>
      %c2_66 = arith.constant 2 : index
      %c0_67 = arith.constant 0 : index
      %c0_68 = arith.constant 0 : index
      %85 = vector.load %arg6[%c2_66, %c0_67, %c0_68] : memref<5x84x160xf32, #tpu.memory_space<vmem>>, vector<1x84x160xf32>
      %86 = vector.shape_cast %85 : vector<1x84x160xf32> to vector<84x160xf32>
      %cst_69 = arith.constant dense<0.000000e+00> : vector<10x160xf32>
      %87 = tpu.matmul %84, %86, %cst_69 {dimension_numbers = #tpu.dot_dimension_numbers<[1], [0], [0], [1], [0, 0, 1, 1], [], []>} : vector<10x84xf32>, vector<84x160xf32>, vector<10x160xf32> -> vector<10x160xf32>
      %88 = arith.addf %83, %87 : vector<10x160xf32>
      %89 = vector.extract_strided_slice %72 {offsets = [3, 0], sizes = [10, 84], strides = [1, 1]} : vector<14x84xf32> to vector<10x84xf32>
      %c3_70 = arith.constant 3 : index
      %c0_71 = arith.constant 0 : index
      %c0_72 = arith.constant 0 : index
      %90 = vector.load %arg6[%c3_70, %c0_71, %c0_72] : memref<5x84x160xf32, #tpu.memory_space<vmem>>, vector<1x84x160xf32>
      %91 = vector.shape_cast %90 : vector<1x84x160xf32> to vector<84x160xf32>
      %cst_73 = arith.constant dense<0.000000e+00> : vector<10x160xf32>
      %92 = tpu.matmul %89, %91, %cst_73 {dimension_numbers = #tpu.dot_dimension_numbers<[1], [0], [0], [1], [0, 0, 1, 1], [], []>} : vector<10x84xf32>, vector<84x160xf32>, vector<10x160xf32> -> vector<10x160xf32>
      %93 = arith.addf %88, %92 : vector<10x160xf32>
      %94 = vector.extract_strided_slice %72 {offsets = [4, 0], sizes = [10, 84], strides = [1, 1]} : vector<14x84xf32> to vector<10x84xf32>
      %c4_74 = arith.constant 4 : index
      %c0_75 = arith.constant 0 : index
      %c0_76 = arith.constant 0 : index
      %95 = vector.load %arg6[%c4_74, %c0_75, %c0_76] : memref<5x84x160xf32, #tpu.memory_space<vmem>>, vector<1x84x160xf32>
      %96 = vector.shape_cast %95 : vector<1x84x160xf32> to vector<84x160xf32>
      %cst_77 = arith.constant dense<0.000000e+00> : vector<10x160xf32>
      %97 = tpu.matmul %94, %96, %cst_77 {dimension_numbers = #tpu.dot_dimension_numbers<[1], [0], [0], [1], [0, 0, 1, 1], [], []>} : vector<10x84xf32>, vector<84x160xf32>, vector<10x160xf32> -> vector<10x160xf32>
      %98 = arith.addf %93, %97 : vector<10x160xf32>
      %99 = vector.broadcast %1 : vector<1x160xf32> to vector<10x160xf32>
      %100 = arith.addf %98, %99 : vector<10x160xf32>
      %101 = vector.extract_strided_slice %100 {offsets = [0, 0], sizes = [9, 159], strides = [1, 1]} : vector<10x160xf32> to vector<9x159xf32>
      %102 = vector.extract_strided_slice %100 {offsets = [1, 0], sizes = [9, 159], strides = [1, 1]} : vector<10x160xf32> to vector<9x159xf32>
      %103 = arith.maximumf %101, %102 : vector<9x159xf32>
      %104 = vector.extract_strided_slice %100 {offsets = [0, 1], sizes = [9, 159], strides = [1, 1]} : vector<10x160xf32> to vector<9x159xf32>
      %105 = vector.extract_strided_slice %100 {offsets = [1, 1], sizes = [9, 159], strides = [1, 1]} : vector<10x160xf32> to vector<9x159xf32>
      %106 = arith.maximumf %104, %105 : vector<9x159xf32>
      %107 = arith.maximumf %103, %106 : vector<9x159xf32>
      %cst_78 = arith.constant dense<0.000000e+00> : vector<9x80xf32>
      %108 = tpu.matmul %107, %5, %cst_78 {dimension_numbers = #tpu.dot_dimension_numbers<[1], [0], [0], [1], [0, 0, 1, 1], [], []>} : vector<9x159xf32>, vector<159x80xf32>, vector<9x80xf32> -> vector<9x80xf32>
      %cst_79 = arith.constant dense<0.000000e+00> : vector<5x80xf32>
      %109 = tpu.matmul %4, %108, %cst_79 {dimension_numbers = #tpu.dot_dimension_numbers<[1], [0], [0], [1], [0, 0, 1, 1], [], []>} : vector<5x9xf32>, vector<9x80xf32>, vector<5x80xf32> -> vector<5x80xf32>
      %110 = vector.extract_strided_slice %109 {offsets = [0, 0], sizes = [1, 80], strides = [1, 1]} : vector<5x80xf32> to vector<1x80xf32>
      %111 = vector.extract_strided_slice %109 {offsets = [1, 0], sizes = [1, 80], strides = [1, 1]} : vector<5x80xf32> to vector<1x80xf32>
      %112 = vector.extract_strided_slice %109 {offsets = [2, 0], sizes = [1, 80], strides = [1, 1]} : vector<5x80xf32> to vector<1x80xf32>
      %113 = vector.extract_strided_slice %109 {offsets = [3, 0], sizes = [1, 80], strides = [1, 1]} : vector<5x80xf32> to vector<1x80xf32>
      %114 = vector.extract_strided_slice %109 {offsets = [4, 0], sizes = [1, 80], strides = [1, 1]} : vector<5x80xf32> to vector<1x80xf32>
      %115 = tpu.concatenate %110, %111, %112, %113, %114 in 1 : vector<1x80xf32>, vector<1x80xf32>, vector<1x80xf32>, vector<1x80xf32>, vector<1x80xf32> -> vector<1x400xf32>
      %116 = arith.index_cast %arg18 : i32 to index
      %c0_80 = arith.constant 0 : index
      %117 = vector.load %arg17[%116, %c0_80] : memref<2x400xf32, #tpu.memory_space<vmem>>, vector<1x400xf32>
      tpu.vector_store %arg17[%116, %c0_80], %115 {strides = array<i32>} : memref<2x400xf32, #tpu.memory_space<vmem>>, vector<1x400xf32>,
    }
    %c2_i32_11 = arith.constant 2 : i32
    %c0_12 = arith.constant 0 : index
    %c0_13 = arith.constant 0 : index
    %7 = vector.load %arg17[%c0_12, %c0_13] : memref<2x400xf32, #tpu.memory_space<vmem>>, vector<2x400xf32>
    %c0_14 = arith.constant 0 : index
    %c0_15 = arith.constant 0 : index
    %8 = vector.load %arg10[%c0_14, %c0_15] : memref<400x120xf32, #tpu.memory_space<vmem>>, vector<400x120xf32>
    %cst = arith.constant dense<0.000000e+00> : vector<2x120xf32>
    %9 = tpu.matmul %7, %8, %cst {dimension_numbers = #tpu.dot_dimension_numbers<[1], [0], [0], [1], [0, 0, 1, 1], [], []>} : vector<2x400xf32>, vector<400x120xf32>, vector<2x120xf32> -> vector<2x120xf32>
    %c0_16 = arith.constant 0 : index
    %c0_17 = arith.constant 0 : index
    %10 = vector.load %arg11[%c0_16, %c0_17] : memref<1x120xf32, #tpu.memory_space<vmem>>, vector<1x120xf32>
    %11 = vector.broadcast %10 : vector<1x120xf32> to vector<2x120xf32>
    %12 = arith.addf %9, %11 : vector<2x120xf32>
    %c0_18 = arith.constant 0 : index
    %c0_19 = arith.constant 0 : index
    %13 = vector.load %arg12[%c0_18, %c0_19] : memref<120x84xf32, #tpu.memory_space<vmem>>, vector<120x84xf32>
    %cst_20 = arith.constant dense<0.000000e+00> : vector<2x84xf32>
    %14 = tpu.matmul %12, %13, %cst_20 {dimension_numbers = #tpu.dot_dimension_numbers<[1], [0], [0], [1], [0, 0, 1, 1], [], []>} : vector<2x120xf32>, vector<120x84xf32>, vector<2x84xf32> -> vector<2x84xf32>
    %c0_21 = arith.constant 0 : index
    %c0_22 = arith.constant 0 : index
    %15 = vector.load %arg13[%c0_21, %c0_22] : memref<1x84xf32, #tpu.memory_space<vmem>>, vector<1x84xf32>
    %16 = vector.broadcast %15 : vector<1x84xf32> to vector<2x84xf32>
    %17 = arith.addf %14, %16 : vector<2x84xf32>
    %c0_23 = arith.constant 0 : index
    %c0_24 = arith.constant 0 : index
    %18 = vector.load %arg14[%c0_23, %c0_24] : memref<84x10xf32, #tpu.memory_space<vmem>>, vector<84x10xf32>
    %cst_25 = arith.constant dense<0.000000e+00> : vector<2x10xf32>
    %19 = tpu.matmul %17, %18, %cst_25 {dimension_numbers = #tpu.dot_dimension_numbers<[1], [0], [0], [1], [0, 0, 1, 1], [], []>} : vector<2x84xf32>, vector<84x10xf32>, vector<2x10xf32> -> vector<2x10xf32>
    %c0_26 = arith.constant 0 : index
    %c0_27 = arith.constant 0 : index
    %20 = vector.load %arg15[%c0_26, %c0_27] : memref<1x10xf32, #tpu.memory_space<vmem>>, vector<1x10xf32>
    %21 = vector.broadcast %20 : vector<1x10xf32> to vector<2x10xf32>
    %22 = arith.addf %19, %21 : vector<2x10xf32>
    %c0_28 = arith.constant 0 : index
    %c0_29 = arith.constant 0 : index
    %23 = vector.load %arg16[%c0_28, %c0_29] : memref<2x10xf32, #tpu.memory_space<vmem>>, vector<2x10xf32>
    tpu.vector_store %arg16[%c0_28, %c0_29], %22 {strides = array<i32>} : memref<2x10xf32, #tpu.memory_space<vmem>>, vector<2x10xf32>,
    return
  }
  func.func @transform_0(%arg0: i32) -> (i32, i32) {
    %c0_i32 = arith.constant 0 : i32
    %c0_i32_0 = arith.constant 0 : i32
    return %arg0, %c0_i32 : i32, i32
  }
  func.func @transform_1(%arg0: i32) -> (i32, i32, i32) {
    %c0_i32 = arith.constant 0 : i32
    %c0_i32_0 = arith.constant 0 : i32
    %c0_i32_1 = arith.constant 0 : i32
    %c0_i32_2 = arith.constant 0 : i32
    return %c0_i32, %c0_i32_0, %c0_i32_1 : i32, i32, i32
  }
  func.func @transform_2(%arg0: i32) -> (i32, i32) {
    %c0_i32 = arith.constant 0 : i32
    %c0_i32_0 = arith.constant 0 : i32
    %c0_i32_1 = arith.constant 0 : i32
    return %c0_i32, %c0_i32_0 : i32, i32
  }
  func.func @transform_3(%arg0: i32) -> (i32, i32) {
    %c0_i32 = arith.constant 0 : i32
    %c0_i32_0 = arith.constant 0 : i32
    %c0_i32_1 = arith.constant 0 : i32
    return %c0_i32, %c0_i32_0 : i32, i32
  }
  func.func @transform_4(%arg0: i32) -> (i32, i32) {
    %c0_i32 = arith.constant 0 : i32
    %c0_i32_0 = arith.constant 0 : i32
    %c0_i32_1 = arith.constant 0 : i32
    return %c0_i32, %c0_i32_0 : i32, i32
  }
  func.func @transform_5(%arg0: i32) -> (i32, i32, i32) {
    %c0_i32 = arith.constant 0 : i32
    %c0_i32_0 = arith.constant 0 : i32
    %c0_i32_1 = arith.constant 0 : i32
    %c0_i32_2 = arith.constant 0 : i32
    return %c0_i32, %c0_i32_0, %c0_i32_1 : i32, i32, i32
  }
  func.func @transform_6(%arg0: i32) -> (i32, i32) {
    %c0_i32 = arith.constant 0 : i32
    %c0_i32_0 = arith.constant 0 : i32
    %c0_i32_1 = arith.constant 0 : i32
    return %c0_i32, %c0_i32_0 : i32, i32
  }
  func.func @transform_7(%arg0: i32) -> (i32, i32) {
    %c0_i32 = arith.constant 0 : i32
    %c0_i32_0 = arith.constant 0 : i32
    %c0_i32_1 = arith.constant 0 : i32
    return %c0_i32, %c0_i32_0 : i32, i32
  }
  func.func @transform_8(%arg0: i32) -> (i32, i32) {
    %c0_i32 = arith.constant 0 : i32
    %c0_i32_0 = arith.constant 0 : i32
    %c0_i32_1 = arith.constant 0 : i32
    return %c0_i32, %c0_i32_0 : i32, i32
  }
  func.func @transform_9(%arg0: i32) -> (i32, i32) {
    %c0_i32 = arith.constant 0 : i32
    %c0_i32_0 = arith.constant 0 : i32
    %c0_i32_1 = arith.constant 0 : i32
    return %c0_i32, %c0_i32_0 : i32, i32
  }
  func.func @transform_10(%arg0: i32) -> (i32, i32) {
    %c0_i32 = arith.constant 0 : i32
    %c0_i32_0 = arith.constant 0 : i32
    %c0_i32_1 = arith.constant 0 : i32
    return %c0_i32, %c0_i32_0 : i32, i32
  }
  func.func @transform_11(%arg0: i32) -> (i32, i32) {
    %c0_i32 = arith.constant 0 : i32
    %c0_i32_0 = arith.constant 0 : i32
    %c0_i32_1 = arith.constant 0 : i32
    return %c0_i32, %c0_i32_0 : i32, i32
  }
  func.func @transform_12(%arg0: i32) -> (i32, i32) {
    %c0_i32 = arith.constant 0 : i32
    %c0_i32_0 = arith.constant 0 : i32
    %c0_i32_1 = arith.constant 0 : i32
    return %c0_i32, %c0_i32_0 : i32, i32
  }
  func.func @transform_13(%arg0: i32) -> (i32, i32) {
    %c0_i32 = arith.constant 0 : i32
    %c0_i32_0 = arith.constant 0 : i32
    %c0_i32_1 = arith.constant 0 : i32
    return %c0_i32, %c0_i32_0 : i32, i32
  }
  func.func @transform_14(%arg0: i32) -> (i32, i32) {
    %c0_i32 = arith.constant 0 : i32
    %c0_i32_0 = arith.constant 0 : i32
    %c0_i32_1 = arith.constant 0 : i32
    return %c0_i32, %c0_i32_0 : i32, i32
  }
  func.func @transform_15(%arg0: i32) -> (i32, i32) {
    %c0_i32 = arith.constant 0 : i32
    %c0_i32_0 = arith.constant 0 : i32
    return %arg0, %c0_i32 : i32, i32
  }
}

</mosaic_0001>

<bundles_post_ra>
// kernel: lenet_forward.1
= control target key start
LH: loop header
LB: loop body
LE: loop exit
PB: predicated region body
PF: predicated region fallthrough
CT: control target
= control target key end

     0   :  { %20 = vsyncpa [#allocation4], 0  ;;  %s4423_s0 = inlined_call_operand.vmem [shape: f32[64,96], index: 0, kind: input, shape index: {}]   ;;  %s4424_s1 = inlined_call_operand.vmem [shape: f32[5,96,168], index: 1, kind: input, shape index: {}]   ;;  %s4425_s2 = inlined_call_operand.vmem [shape: f32[1,168], index: 2, kind: input, shape index: {}]   ;;  %s4426_s3 = inlined_call_operand.vmem [shape: f32[14,27], index: 3, kind: input, shape index: {}]   ;;  %s4427_s4 = inlined_call_operand.vmem [shape: f32[167,84], index: 4, kind: input, shape index: {}]   ;;  %s4428_s5 = inlined_call_operand.vmem [shape: f32[5,84,160], index: 5, kind: input, shape index: {}]   ;;  %s4429_s6 = inlined_call_operand.vmem [shape: f32[1,160], index: 6, kind: input, shape index: {}]   ;;  %s4430_s7 = inlined_call_operand.vmem [shape: f32[5,9], index: 7, kind: input, shape index: {}]   ;;  %s4431_s8 = inlined_call_operand.vmem [shape: f32[159,80], index: 8, kind: input, shape index: {}]   ;;  %s4432_s9 = inlined_call_operand.vmem [shape: f32[400,120], index: 9, kind: input, shape index: {}]   ;;  %s4433_s10 = inlined_call_operand.vmem [shape: f32[1,120], index: 10, kind: input, shape index: {}]   ;;  %s4434_s11 = inlined_call_operand.vmem [shape: f32[120,84], index: 11, kind: input, shape index: {}]   ;;  %s4435_s12 = inlined_call_operand.vmem [shape: f32[1,84], index: 12, kind: input, shape index: {}]   ;;  %s4436_s13 = inlined_call_operand.vmem [shape: f32[84,10], index: 13, kind: input, shape index: {}]   ;;  %s4437_s14 = inlined_call_operand.vmem [shape: f32[1,10], index: 14, kind: input, shape index: {}]   ;;  %s4438_s15 = inlined_call_operand.hbm [shape: f32[2,10], index: 15, kind: output, shape index: {}]  }
   0x1   :  { %v2954_v0 = vld [vmem:[%s4425_s2] sm:$0x3]  ;;  %v2969_v3 = vld [vmem:[%s4426_s3 + $0x8] sm:$0x3f]  ;;  %v2984_v6 = vld [vmem:[%s4427_s4 + $0x10] sm:$0xff] }
   0x2   :  { %v2959_v1 = vld [vmem:[%s4429_s6] sm:$0x3]  ;;  %v2979_v5 = vld [vmem:[%s4427_s4 + $0x8] sm:$0xff]  ;;  %4448 = vst [vmem:[#allocation9_spill] sm:$0xff] %v2984_v6  ;;  %v2989_v7 = vld [vmem:[%s4427_s4 + $0x18] sm:$0xff] }
   0x3   :  { %4445 = vst [vmem:[#allocation6_spill] sm:$0xff] %v2959_v1  ;;  %v2964_v2 = vld [vmem:[%s4426_s3] sm:$0xff]  ;;  %4447 = vst [vmem:[#allocation8_spill] sm:$0xff] %v2979_v5  ;;  %v2999_v9 = vld [vmem:[%s4427_s4 + $0x28] sm:$0xff]  ;;  %s3181_s3 = smov 0  }
   0x4   :  { %v2974_v4 = vld [vmem:[%s4427_s4] sm:$0xff]  ;;  %4449 = vst [vmem:[#allocation10_spill] sm:$0xff] %v2989_v7  ;;  %4451 = vst [vmem:[#allocation12_spill] sm:$0xff] %v2999_v9  ;;  %v3004_v10 = vld [vmem:[%s4427_s4 + $0x30] sm:$0xff] }
   0x5   :  { %4446 = vst [vmem:[#allocation7_spill] sm:$0xff] %v2974_v4  ;;  %v2994_v8 = vld [vmem:[%s4427_s4 + $0x20] sm:$0xff]  ;;  %4452 = vst [vmem:[#allocation13_spill] sm:$0xff] %v3004_v10  ;;  %v3009_v11 = vld [vmem:[%s4427_s4 + $0x38] sm:$0xff] }
   0x6   :  { %4450 = vst [vmem:[#allocation11_spill] sm:$0xff] %v2994_v8  ;;  %4453 = vst [vmem:[#allocation14_spill] sm:$0xff] %v3009_v11  ;;  %v3014_v12 = vld [vmem:[%s4427_s4 + $0x40] sm:$0xff]  ;;  %v3019_v13 = vld [vmem:[%s4427_s4 + $0x48] sm:$0xff] }
   0x7   :  { %4454 = vst [vmem:[#allocation15_spill] sm:$0xff] %v3014_v12  ;;  %4455 = vst [vmem:[#allocation16_spill] sm:$0xff] %v3019_v13  ;;  %v3024_v14 = vld [vmem:[%s4427_s4 + $0x50] sm:$0xff]  ;;  %v3029_v15 = vld [vmem:[%s4427_s4 + $0x58] sm:$0xff] }
   0x8   :  { %4456 = vst [vmem:[#allocation17_spill] sm:$0xff] %v3024_v14  ;;  %4457 = vst [vmem:[#allocation18_spill] sm:$0xff] %v3029_v15  ;;  %v3034_v16 = vld [vmem:[%s4427_s4 + $0x60] sm:$0xff]  ;;  %v3039_v17 = vld [vmem:[%s4427_s4 + $0x68] sm:$0xff] }
   0x9   :  { %4458 = vst [vmem:[#allocation19_spill] sm:$0xff] %v3034_v16  ;;  %4459 = vst [vmem:[#allocation20_spill] sm:$0xff] %v3039_v17  ;;  %v3044_v18 = vld [vmem:[%s4427_s4 + $0x70] sm:$0xff]  ;;  %v3049_v19 = vld [vmem:[%s4427_s4 + $0x78] sm:$0xff] }
   0xa   :  { %4460 = vst [vmem:[#allocation21_spill] sm:$0xff] %v3044_v18  ;;  %4461 = vst [vmem:[#allocation22_spill] sm:$0xff] %v3049_v19  ;;  %v3054_v20 = vld [vmem:[%s4427_s4 + $0x80] sm:$0xff]  ;;  %v3059_v21 = vld [vmem:[%s4427_s4 + $0x88] sm:$0xff] }
   0xb   :  { %4462 = vst [vmem:[#allocation23_spill] sm:$0xff] %v3054_v20  ;;  %4463 = vst [vmem:[#allocation24_spill] sm:$0xff] %v3059_v21  ;;  %v3064_v22 = vld [vmem:[%s4427_s4 + $0x90] sm:$0xff]  ;;  %v3069_v23 = vld [vmem:[%s4427_s4 + $0x98] sm:$0xff] }
   0xc   :  { %4464 = vst [vmem:[#allocation25_spill] sm:$0xff] %v3064_v22  ;;  %4465 = vst [vmem:[#allocation26_spill] sm:$0xff] %v3069_v23  ;;  %v3074_v24 = vld [vmem:[%s4427_s4 + $0xa0] sm:$0x7f]  ;;  %v3089_v27 = vld [vmem:[%s4431_s8 + $0x8] sm:$0xff] }
   0xd   :  { %4466 = vst [vmem:[#allocation27_spill] sm:$0xff] %v3074_v24  ;;  %v3079_v25 = vld [vmem:[%s4430_s7] sm:$0x1f]  ;;  %v3094_v28 = vld [vmem:[%s4431_s8 + $0x10] sm:$0xff]  ;;  %v3099_v29 = vld [vmem:[%s4431_s8 + $0x18] sm:$0xff] }
   0xe   :  { %4467 = vst [vmem:[#allocation28_spill] sm:$0xff] %v3079_v25  ;;  %v3084_v26 = vld [vmem:[%s4431_s8] sm:$0xff]  ;;  %v3109_v31 = vld [vmem:[%s4431_s8 + $0x28] sm:$0xff]  ;;  %v3114_v32 = vld [vmem:[%s4431_s8 + $0x30] sm:$0xff] }
   0xf   :  { %v3104_v30 = vld [vmem:[%s4431_s8 + $0x20] sm:$0xff]  ;;  %v3119_v33 = vld [vmem:[%s4431_s8 + $0x38] sm:$0xff]  ;;  %v3129_v35 = vld [vmem:[%s4431_s8 + $0x48] sm:$0xff] }
  0x10   :  { %v3124_v34 = vld [vmem:[%s4431_s8 + $0x40] sm:$0xff]  ;;  %v3134_v36 = vld [vmem:[%s4431_s8 + $0x50] sm:$0xff]  ;;  %v3139_v37 = vld [vmem:[%s4431_s8 + $0x58] sm:$0xff] }
  0x11   :  { %v3144_v38 = vld [vmem:[%s4431_s8 + $0x60] sm:$0xff]  ;;  %v3149_v39 = vld [vmem:[%s4431_s8 + $0x68] sm:$0xff]  ;;  %v3154_v40 = vld [vmem:[%s4431_s8 + $0x70] sm:$0xff] }
  0x12   :  { %v3159_v41 = vld [vmem:[%s4431_s8 + $0x78] sm:$0xff]  ;;  %v3164_v42 = vld [vmem:[%s4431_s8 + $0x80] sm:$0xff]  ;;  %v3169_v43 = vld [vmem:[%s4431_s8 + $0x88] sm:$0xff] }
  0x13   :  { %4468 = vst [vmem:[#allocation29_spill] sm:$0xff] %v3164_v42  ;;  %v3174_v44 = vld [vmem:[%s4431_s8 + $0x90] sm:$0xff]  ;;  %v3179_v45 = vld [vmem:[%s4431_s8 + $0x98] sm:$0x7f] }
  0x14 LB: > { %v2421_v46 = vld [vmem:[%s4424_s1 + $0x178] sm:$0xff]  ;;  %v2420_v48 = vld [vmem:[%s4424_s1 + $0x170] sm:$0xff]  ;;  %v2419_v50 = vld [vmem:[%s4424_s1 + $0x168] sm:$0xff]  ;;  %s2392_s17 = sshll.u32 %s2857_s3, 5  ;;  %vm164_vm0 = vcmask 785408   ;;  %vm814_vm1 = vcmask 1046528   ;;  %s2857_s3 = sphi %s3181_s3, %s102_s3  }
  0x15   : > { %v132_v47 = vld [vmem:[%s4424_s1 + $0xb8] sm:$0xff]  ;;  %185 = vmatprep.subr.mxu0 %v2421_v46  ;;  %v131_v49 = vld [vmem:[%s4424_s1 + $0xb0] sm:$0xff]  ;;  %v130_v51 = vld [vmem:[%s4424_s1 + $0xa8] sm:$0xff]  ;;  %s3328_s28 = scalar_lea.vmem %s4423_s0, %s2392_s17  ;;  %vm869_vm2 = vcmask 1039360   ;;  %vm890_vm3 = vcmask 318464   ;;  %vm991_vm4 = vcmask 220160  }
  0x16   : > { %286 = vmatprep.subr.mxu1 %v132_v47  ;;  %186 = vmatpush1.msra.mxu0 %v2420_v48  ;;  %v2418_v52 = vld [vmem:[%s4424_s1 + $0x160] sm:$0xff]  ;;  %v2417_v54 = vld [vmem:[%s4424_s1 + $0x158] sm:$0xff]  ;;  %v2416_v56 = vld [vmem:[%s4424_s1 + $0x150] sm:$0xff]  ;;  %vm1132_vm5 = vcmask 1043456   ;;  %vm998_vm6 = vcmask 1042432   ;;  %vm1127_vm7 = vcmask 687104  }
  0x17   : > { %287 = vmatpush1.msra.mxu1 %v131_v49  ;;  %v129_v53 = vld [vmem:[%s4424_s1 + $0xa0] sm:$0xff]  ;;  %187 = vmatprep.subr.mxu0 %v2419_v50  ;;  %v128_v55 = vld [vmem:[%s4424_s1 + $0x98] sm:$0xff]  ;;  %v127_v57 = vld [vmem:[%s4424_s1 + $0x90] sm:$0xff]  ;;  %vm1444_vm8 = vcmask 1044480   ;;  %vm1326_vm9 = vcmask 1045504   ;;  %vm1711_vm10 = vcmask 252928  }
  0x18   : > { %288 = vmatprep.subr.mxu1 %v130_v51  ;;  %188 = vmatpush1.msra.mxu0 %v2418_v52  ;;  %v2415_v58 = vld [vmem:[%s4424_s1 + $0x148] sm:$0xff]  ;;  %v2414_v60 = vld [vmem:[%s4424_s1 + $0x140] sm:$0xff]  ;;  %v2413_v62 = vld [vmem:[%s4424_s1 + $0x138] sm:$0xff]  ;;  %vm2861_vm11 = vmmov 0   ;;  %vm1800_vm12 = vcmask 1040384   ;;  %vm1796_vm13 = vcmask 72704  }
  0x19   : > { %289 = vmatpush1.msra.mxu1 %v129_v53  ;;  %v126_v59 = vld [vmem:[%s4424_s1 + $0x88] sm:$0xff]  ;;  %189 = vmatprep.subr.mxu0 %v2417_v54  ;;  %v125_v61 = vld [vmem:[%s4424_s1 + $0x80] sm:$0xff]  ;;  %v124_v63 = vld [vmem:[%s4424_s1 + $0x78] sm:$0xff]  ;;  %s2863_s20 = smov 80   ;;  %s2864_s21 = smov 64   ;;  %vm1893_vm14 = vcmask 261120  }
  0x1a   : > { %290 = vmatprep.subr.mxu1 %v128_v55  ;;  %190 = vmatpush1.msra.mxu0 %v2416_v56  ;;  %v2412_v46 = vld [vmem:[%s4424_s1 + $0x130] sm:$0xff]  ;;  %v2411_v48 = vld [vmem:[%s4424_s1 + $0x128] sm:$0xff]  ;;  %v2410_v50 = vld [vmem:[%s4424_s1 + $0x120] sm:$0xff]  ;;  %s2865_s4 = smov 112   ;;  %vm1891_vm15 = vcmask 654336   ;;  %s1931_s8 = sshra.s32 %s2857_s3, 1 }
  0x1b   : > { %291 = vmatpush1.msra.mxu1 %v127_v57  ;;  %191 = vmatprep.subr.mxu0 %v2415_v58  ;;  %v123_v47 = vld [vmem:[%s4424_s1 + $0x70] sm:$0xff]  ;;  %v122_v49 = vld [vmem:[%s4424_s1 + $0x68] sm:$0xff]  ;;  %v121_v51 = vld [vmem:[%s4424_s1 + $0x60] sm:$0xff]  ;;  %s1934_s22 = sand.u32 1, %s2857_s3  ;;  %s2659_s7 = sshll.u32 %s1931_s8, 3 }
  0x1c   : > { %292 = vmatprep.subr.mxu1 %v126_v59  ;;  %192 = vmatpush1.msra.mxu0 %v2414_v60  ;;  %v2409_v52 = vld [vmem:[%s4424_s1 + $0x118] sm:$0xff]  ;;  %v2408_v54 = vld [vmem:[%s4424_s1 + $0x110] sm:$0xff]  ;;  %v2407_v56 = vld [vmem:[%s4424_s1 + $0x108] sm:$0xff]  ;;  %s1937_s23 = sadd.s32 %s2659_s7, %s1934_s22  ;;  %s102_s3 = sadd.s32 1, %s2857_s3  }
  0x1d   : > { %293 = vmatpush1.msra.mxu1 %v125_v61  ;;  %193 = vmatprep.subr.mxu0 %v2413_v62  ;;  %v120_v53 = vld [vmem:[%s4424_s1 + $0x58] sm:$0xff]  ;;  %v119_v55 = vld [vmem:[%s4424_s1 + $0x50] sm:$0xff]  ;;  %v118_v57 = vld [vmem:[%s4424_s1 + $0x48] sm:$0xff]  ;;  %s1938_s24 = scalar_lea.vmem [#allocation2], %s1937_s23  ;;  %p99_p0 = scmp.ge.s32.totalorder %s102_s3, 2  }
  0x1e   : > { %294 = vmatprep.subr.mxu1 %v124_v63  ;;  %194 = vmatpush1.msra.mxu0 %v2412_v46  ;;  %v2406_v58 = vld [vmem:[%s4424_s1 + $0x100] sm:$0xff]  ;;  %v2405_v60 = vld [vmem:[%s4424_s1 + $0xf8] sm:$0xff]  ;;  %v2404_v62 = vld [vmem:[%s4424_s1 + $0xf0] sm:$0xff] }
  0x1f   : > { %295 = vmatpush1.msra.mxu1 %v123_v47  ;;  %195 = vmatprep.subr.mxu0 %v2411_v48  ;;  %v117_v59 = vld [vmem:[%s4424_s1 + $0x40] sm:$0xff]  ;;  %v116_v61 = vld [vmem:[%s4424_s1 + $0x38] sm:$0xff]  ;;  %v115_v63 = vld [vmem:[%s4424_s1 + $0x30] sm:$0xff] }
  0x20   : > { %296 = vmatprep.subr.mxu1 %v122_v49  ;;  %196 = vmatpush1.msra.mxu0 %v2410_v50  ;;  %v2403_v46 = vld [vmem:[%s4424_s1 + $0xe8] sm:$0xff]  ;;  %v2402_v48 = vld [vmem:[%s4424_s1 + $0xe0] sm:$0xff]  ;;  %v2401_v50 = vld [vmem:[%s4424_s1 + $0xd8] sm:$0xff] }
  0x21   : > { %297 = vmatpush1.msra.mxu1 %v121_v51  ;;  %197 = vmatprep.subr.mxu0 %v2409_v52  ;;  %v114_v47 = vld [vmem:[%s4424_s1 + $0x28] sm:$0xff]  ;;  %v113_v49 = vld [vmem:[%s4424_s1 + $0x20] sm:$0xff]  ;;  %v112_v51 = vld [vmem:[%s4424_s1 + $0x18] sm:$0xff] }
  0x22   : > { %298 = vmatprep.subr.mxu1 %v120_v53  ;;  %198 = vmatpush1.msra.mxu0 %v2408_v54  ;;  %v2400_v52 = vld [vmem:[%s4424_s1 + $0xd0] sm:$0xff]  ;;  %v2399_v54 = vld [vmem:[%s4424_s1 + $0xc8] sm:$0xff]  ;;  %v4471_v17 = vld [vmem:[#allocation20_spill] sm:$0xff] }
  0x23   : > { %299 = vmatpush1.msra.mxu1 %v119_v55  ;;  %199 = vmatprep.subr.mxu0 %v2407_v56  ;;  %v111_v53 = vld [vmem:[%s4424_s1 + $0x10] sm:$0xff]  ;;  %v110_v55 = vld [vmem:[%s4424_s1 + $0x8] sm:$0xff]  ;;  %v2398_v56 = vld [vmem:[%s4424_s1 + $0xc0] sm:$0xff] }
  0x24   : > { %300 = vmatprep.subr.mxu1 %v118_v57  ;;  %200 = vmatpush1.msra.mxu0 %v2406_v58  ;;  %v109_v57 = vld [vmem:[%s4424_s1] sm:$0xff]  ;;  %v4469_v19 = vld [vmem:[#allocation22_spill] sm:$0xff]  ;;  %v4472_v16 = vld [vmem:[#allocation19_spill] sm:$0xff] }
  0x25   : > { %301 = vmatpush1.msra.mxu1 %v117_v59  ;;  %201 = vmatprep.subr.mxu0 %v2405_v60  ;;  %v2394_v58 = vld [vmem:[%s3328_s28 + $0x1] sm:$0xff]  ;;  %v4439_v60 = vmov 0.0   ;;  %v4473_v15 = vld [vmem:[#allocation18_spill] sm:$0xff]  ;;  %v4476_v12 = vld [vmem:[#allocation15_spill] sm:$0xff] }
  0x26   : > { %302 = vmatprep.subr.mxu1 %v116_v61  ;;  %202 = vmatpush1.msra.mxu0 %v2404_v62  ;;  %v105_v59 = vld [vmem:[%s3328_s28] sm:$0xff]  ;;  %v2458_v61 = vld [vmem:[%s4424_s1 + $0x238] sm:$0xff]  ;;  %v4477_v11 = vld [vmem:[#allocation14_spill] sm:$0xff] }
  0x27   : > { %303 = vmatpush1.msra.mxu1 %v115_v63  ;;  %203 = vmatprep.subr.mxu0 %v2403_v46  ;;  %v2491_v62 = vld [vmem:[%s4424_s1 + $0x2f8] sm:$0xff]  ;;  %v2457_v63 = vld [vmem:[%s4424_s1 + $0x230] sm:$0xff]  ;;  %v4470_v18 = vld [vmem:[#allocation21_spill] sm:$0xff] }
  0x28   : > { %304 = vmatprep.subr.mxu1 %v114_v47  ;;  %204 = vmatpush1.msra.mxu0 %v2402_v48  ;;  %v2490_v46 = vld [vmem:[%s4424_s1 + $0x2f0] sm:$0xff]  ;;  %v2456_v47 = vld [vmem:[%s4424_s1 + $0x228] sm:$0xff]  ;;  %v4475_v13 = vld [vmem:[#allocation16_spill] sm:$0xff] }
  0x29   : > { %305 = vmatpush1.msra.mxu1 %v113_v49  ;;  %205 = vmatprep.subr.mxu0 %v2401_v50  ;;  %v2489_v48 = vld [vmem:[%s4424_s1 + $0x2e8] sm:$0xff]  ;;  %v2455_v49 = vld [vmem:[%s4424_s1 + $0x220] sm:$0xff]  ;;  %v4480_v8 = vld [vmem:[#allocation11_spill] sm:$0xff] }
  0x2a   : > { %306 = vmatprep.subr.mxu1 %v112_v51  ;;  %206 = vmatpush1.msra.mxu0 %v2400_v52  ;;  %v2488_v50 = vld [vmem:[%s4424_s1 + $0x2e0] sm:$0xff]  ;;  %v2454_v51 = vld [vmem:[%s4424_s1 + $0x218] sm:$0xff]  ;;  %v4481_v7 = vld [vmem:[#allocation10_spill] sm:$0xff] }
  0x2b   : > { %307 = vmatpush1.msra.mxu1 %v111_v53  ;;  %207 = vmatprep.subr.mxu0 %v2399_v54  ;;  %v2487_v52 = vld [vmem:[%s4424_s1 + $0x2d8] sm:$0xff]  ;;  %v2453_v53 = vld [vmem:[%s4424_s1 + $0x210] sm:$0xff]  ;;  %v4474_v14 = vld [vmem:[#allocation17_spill] sm:$0xff] }
  0x2c   : > { %308 = vmatprep.subr.mxu1 %v110_v55  ;;  %208 = vmatpush1.msra.mxu0 %v2398_v56  ;;  %v2486_v54 = vld [vmem:[%s4424_s1 + $0x2d0] sm:$0xff]  ;;  %v2452_v55 = vld [vmem:[%s4424_s1 + $0x208] sm:$0xff]  ;;  %v4479_v9 = vld [vmem:[#allocation12_spill] sm:$0xff] }
  0x2d   : > { %241 = vmatprep.mubr.f32.mxu0 %v4439_v60  ;;  %309 = vmatpush1.msra.mxu1 %v109_v57  ;;  %v2485_v56 = vld [vmem:[%s4424_s1 + $0x2c8] sm:$0xff]  ;;  %v2451_v57 = vld [vmem:[%s4424_s1 + $0x200] sm:$0xff]  ;;  %v4484_v4 = vld [vmem:[#allocation7_spill] sm:$0xff] }
  0x2e   : > { %342 = vmatprep.mubr.f32.mxu1 %v4439_v60  ;;  %2422 = vmatmul.mubr.msk.f32.vlgmr.msra.gmra.mxu0 %vm164_vm0, %v2394_v58  ;;  %v2484_v58 = vld [vmem:[%s4424_s1 + $0x2c0] sm:$0xff]  ;;  %v4485_v24 = vld [vmem:[#allocation27_spill] sm:$0xff]  ;;  %v4486_v23 = vld [vmem:[#allocation26_spill] sm:$0xff] }
  0x2f   : > { %2426 = vmatmul.mubr.msk.f32.vlgmr.msra.gmra.mxu1 %vm164_vm0, %v105_v59  ;;  %418 = vmatprep.subr.mxu0 %v2458_v61  ;;  %v2450_v59 = vld [vmem:[%s4424_s1 + $0x1f8] sm:$0xff]  ;;  %v2449_v61 = vld [vmem:[%s4424_s1 + $0x1f0] sm:$0xff]  ;;  %v4478_v10 = vld [vmem:[#allocation13_spill] sm:$0xff] }
  0x30   : > { %558 = vmatprep.subr.mxu1 %v2491_v62  ;;  %419 = vmatpush1.msra.mxu0 %v2457_v63  ;;  %v2448_v62 = vld [vmem:[%s4424_s1 + $0x1e8] sm:$0xff]  ;;  %v2483_v63 = vld [vmem:[%s4424_s1 + $0x2b8] sm:$0xff] }
  0x31   : > { %559 = vmatpush1.msra.mxu1 %v2490_v46  ;;  %420 = vmatprep.subr.mxu0 %v2456_v47  ;;  %v2395_v46 = vld [vmem:[%s3328_s28 + $0x9] sm:$0xff]  ;;  %v4483_v5 = vld [vmem:[#allocation8_spill] sm:$0xff]  ;;  %v4489_v20 = vld [vmem:[#allocation23_spill] sm:$0xff] }
  0x32   : > { %560 = vmatprep.subr.mxu1 %v2489_v48  ;;  %421 = vmatpush1.msra.mxu0 %v2455_v49  ;;  %v106_v47 = vld [vmem:[%s3328_s28 + $0x8] sm:$0xff]  ;;  %v2447_v48 = vld [vmem:[%s4424_s1 + $0x1e0] sm:$0xff]  ;;  %v2482_v49 = vld [vmem:[%s4424_s1 + $0x2b0] sm:$0xff] }
  0x33   : > { %561 = vmatpush1.msra.mxu1 %v2488_v50  ;;  %422 = vmatprep.subr.mxu0 %v2454_v51  ;;  %v2446_v50 = vld [vmem:[%s4424_s1 + $0x1d8] sm:$0xff]  ;;  %v2481_v51 = vld [vmem:[%s4424_s1 + $0x2a8] sm:$0xff] }
  0x34   : > { %562 = vmatprep.subr.mxu1 %v2487_v52  ;;  %423 = vmatpush1.msra.mxu0 %v2453_v53  ;;  %v2445_v52 = vld [vmem:[%s4424_s1 + $0x1d0] sm:$0xff]  ;;  %v2480_v53 = vld [vmem:[%s4424_s1 + $0x2a0] sm:$0xff] }
  0x35   : > { %563 = vmatpush1.msra.mxu1 %v2486_v54  ;;  %424 = vmatprep.subr.mxu0 %v2452_v55  ;;  %v2444_v54 = vld [vmem:[%s4424_s1 + $0x1c8] sm:$0xff]  ;;  %v2479_v55 = vld [vmem:[%s4424_s1 + $0x298] sm:$0xff] }
  0x36   : > { %564 = vmatprep.subr.mxu1 %v2485_v56  ;;  %425 = vmatpush1.msra.mxu0 %v2451_v57  ;;  %v2396_v56 = vld [vmem:[%s3328_s28 + $0x11] sm:$0xff]  ;;  %v4482_v6 = vld [vmem:[#allocation9_spill] sm:$0xff]  ;;  %v4488_v21 = vld [vmem:[#allocation24_spill] sm:$0xff] }
  0x37   : > { %565 = vmatpush1.msra.mxu1 %v2484_v58  ;;  %426 = vmatprep.subr.mxu0 %v2450_v59  ;;  %v107_v57 = vld [vmem:[%s3328_s28 + $0x10] sm:$0xff]  ;;  %v2443_v58 = vld [vmem:[%s4424_s1 + $0x1c0] sm:$0xff] }
  0x38   : > { %247 = vmatprep.mubr.f32.mxu0 %v4439_v60  ;;  %427 = vmatpush1.msra.mxu0 %v2449_v61  ;;  %v2478_v59 = vld [vmem:[%s4424_s1 + $0x290] sm:$0xff]  ;;  %v2442_v61 = vld [vmem:[%s4424_s1 + $0x1b8] sm:$0xff]  ;;  %v4487_v22 = vld [vmem:[#allocation25_spill] sm:$0xff] }
  0x39   : > { %348 = vmatprep.mubr.f32.mxu1 %v4439_v60  ;;  %428 = vmatprep.subr.mxu0 %v2448_v62  ;;  %v2477_v62 = vld [vmem:[%s4424_s1 + $0x288] sm:$0xff] }
  0x3a   : > { %566 = vmatprep.subr.mxu1 %v2483_v63  ;;  %2423 = vmatmul.mubr.msk.f32.gmra.mxu0 %vm164_vm0, %v2395_v46  ;;  %v2441_v63 = vld [vmem:[%s4424_s1 + $0x1b0] sm:$0xff]  ;;  %v2476_v46 = vld [vmem:[%s4424_s1 + $0x280] sm:$0xff] }
  0x3b   : > { %2427 = vmatmul.mubr.msk.f32.gmra.mxu1 %vm164_vm0, %v106_v47  ;;  %429 = vmatpush1.msra.mxu0 %v2447_v48  ;;  %v2440_v47 = vld [vmem:[%s4424_s1 + $0x1a8] sm:$0xff]  ;;  %v2475_v48 = vld [vmem:[%s4424_s1 + $0x278] sm:$0xff] }
  0x3c   : > { %567 = vmatpush1.msra.mxu1 %v2482_v49  ;;  %430 = vmatprep.subr.mxu0 %v2446_v50  ;;  %v2397_v49 = vld [vmem:[%s3328_s28 + $0x19] sm:$0xf] }
  0x3d   : > { %568 = vmatprep.subr.mxu1 %v2481_v51  ;;  %431 = vmatpush1.msra.mxu0 %v2445_v52  ;;  %v108_v50 = vld [vmem:[%s3328_s28 + $0x18] sm:$0xf]  ;;  %v2439_v51 = vld [vmem:[%s4424_s1 + $0x1a0] sm:$0xff]  ;;  %v2474_v52 = vld [vmem:[%s4424_s1 + $0x270] sm:$0xff] }
  0x3e   : > { %569 = vmatpush1.msra.mxu1 %v2480_v53  ;;  %253 = vmatprep.mubr.f32.mxu0 %v4439_v60  ;;  %v2438_v53 = vld [vmem:[%s4424_s1 + $0x198] sm:$0xff] }
  0x3f   : > { %354 = vmatprep.mubr.f32.mxu1 %v4439_v60  ;;  %432 = vmatprep.subr.mxu0 %v2444_v54  ;;  %v2473_v54 = vld [vmem:[%s4424_s1 + $0x268] sm:$0xff] }
  0x40   : > { %570 = vmatprep.subr.mxu1 %v2479_v55  ;;  %2424 = vmatmul.mubr.msk.f32.gmra.mxu0 %vm164_vm0, %v2396_v56  ;;  %v2437_v55 = vld [vmem:[%s4424_s1 + $0x190] sm:$0xff]  ;;  %v2472_v56 = vld [vmem:[%s4424_s1 + $0x260] sm:$0xff] }
  0x41   : > { %2428 = vmatmul.mubr.msk.f32.gmra.mxu1 %vm164_vm0, %v107_v57  ;;  %433 = vmatpush1.msra.mxu0 %v2443_v58  ;;  %v2436_v57 = vld [vmem:[%s4424_s1 + $0x188] sm:$0xff]  ;;  %v2471_v58 = vld [vmem:[%s4424_s1 + $0x258] sm:$0xff] }
  0x42   : > { %571 = vmatpush1.msra.mxu1 %v2478_v59  ;;  %434 = vmatprep.subr.mxu0 %v2442_v61  ;;  %v2435_v59 = vld [vmem:[%s4424_s1 + $0x180] sm:$0xff]  ;;  %v2470_v61 = vld [vmem:[%s4424_s1 + $0x250] sm:$0xff] }
  0x43   : > { %572 = vmatprep.subr.mxu1 %v2477_v62  ;;  %435 = vmatpush1.msra.mxu0 %v2441_v63  ;;  %v2431_v62 = vld [vmem:[%s3328_s28 + $0x2] sm:$0xff] }
  0x44   : > { %573 = vmatpush1.msra.mxu1 %v2476_v46  ;;  %259 = vmatprep.mubr.f32.mxu0 %v4439_v60  ;;  %v2469_v63 = vld [vmem:[%s4424_s1 + $0x248] sm:$0xff]  ;;  %v2524_v46 = vld [vmem:[%s4424_s1 + $0x3b8] sm:$0xff] }
  0x45   : > { %360 = vmatprep.mubr.f32.mxu1 %v4439_v60  ;;  %436 = vmatprep.subr.mxu0 %v2440_v47  ;;  %v2468_v47 = vld [vmem:[%s4424_s1 + $0x240] sm:$0xff] }
  0x46   : > { %574 = vmatprep.subr.mxu1 %v2475_v48  ;;  %2425 = vmatmul.mubr.msk.f32.gmra.mxu0 %vm164_vm0, %v2397_v49  ;;  %v2523_v48 = vld [vmem:[%s4424_s1 + $0x3b0] sm:$0xff]  ;;  %v2464_v49 = vld [vmem:[%s3328_s28 + $0x3] sm:$0xff] }
  0x47   : > { %2429 = vmatmul.mubr.msk.f32.gmra.mxu1 %vm164_vm0, %v108_v50  ;;  %437 = vmatpush1.msra.mxu0 %v2439_v51  ;;  %v2522_v50 = vld [vmem:[%s4424_s1 + $0x3a8] sm:$0xff]  ;;  %v2521_v51 = vld [vmem:[%s4424_s1 + $0x3a0] sm:$0xff] }
  0x48   : > { %575 = vmatpush1.msra.mxu1 %v2474_v52  ;;  %438 = vmatprep.subr.mxu0 %v2438_v53  ;;  %v2432_v52 = vld [vmem:[%s3328_s28 + $0xa] sm:$0xff]  ;;  %v2520_v53 = vld [vmem:[%s4424_s1 + $0x398] sm:$0xff] }
  0x49   : > { %576 = vmatprep.subr.mxu1 %v2473_v54  ;;  %439 = vmatpush1.msra.mxu0 %v2437_v55  ;;  %v2519_v54 = vld [vmem:[%s4424_s1 + $0x390] sm:$0xff] }
  0x4a   : > { %577 = vmatpush1.msra.mxu1 %v2472_v56  ;;  %440 = vmatprep.subr.mxu0 %v2436_v57  ;;  %v2465_v55 = vld [vmem:[%s3328_s28 + $0xb] sm:$0xff]  ;;  %v2517_v57 = vld [vmem:[%s4424_s1 + $0x380] sm:$0xff] }
  0x4b   : > { %578 = vmatprep.subr.mxu1 %v2471_v58  ;;  %441 = vmatpush1.msra.mxu0 %v2435_v59  ;;  %v2518_v56 = vld [vmem:[%s4424_s1 + $0x388] sm:$0xff]  ;;  %v2433_v58 = vld [vmem:[%s3328_s28 + $0x12] sm:$0xff] }
  0x4c   : > { %474 = vmatprep.mubr.f32.mxu0 %v4439_v60  ;;  %579 = vmatpush1.msra.mxu1 %v2470_v61  ;;  %v2516_v59 = vld [vmem:[%s4424_s1 + $0x378] sm:$0xff]  ;;  %v2515_v61 = vld [vmem:[%s4424_s1 + $0x370] sm:$0xff] }
  0x4d   : > { %2459 = vmatmul.mubr.msk.f32.vlgmr.msra.gmra.mxu0 %vm164_vm0, %v2431_v62  ;;  %580 = vmatprep.subr.mxu1 %v2469_v63  ;;  %v2466_v62 = vld [vmem:[%s3328_s28 + $0x13] sm:$0xff]  ;;  %v2514_v63 = vld [vmem:[%s4424_s1 + $0x368] sm:$0xff] }
  0x4e   : > { %698 = vmatprep.subr.mxu0 %v2524_v46  ;;  %581 = vmatpush1.msra.mxu1 %v2468_v47  ;;  %v2513_v46 = vld [vmem:[%s4424_s1 + $0x360] sm:$0xff]  ;;  %v2434_v47 = vld [vmem:[%s3328_s28 + $0x1a] sm:$0xf] }
  0x4f   : > { %614 = vmatprep.mubr.f32.mxu1 %v4439_v60  ;;  %699 = vmatpush1.msra.mxu0 %v2523_v48  ;;  %v2512_v48 = vld [vmem:[%s4424_s1 + $0x358] sm:$0xff] }
  0x50   : > { %2492 = vmatmul.mubr.msk.f32.vlgmr.msra.gmra.mxu1 %vm164_vm0, %v2464_v49  ;;  %700 = vmatprep.subr.mxu0 %v2522_v50  ;;  %v2511_v49 = vld [vmem:[%s4424_s1 + $0x350] sm:$0xff]  ;;  %v2467_v50 = vld [vmem:[%s3328_s28 + $0x1b] sm:$0xf] }
  0x51   : > { %480 = vmatprep.mubr.f32.mxu0 %v4439_v60  ;;  %701 = vmatpush1.msra.mxu0 %v2521_v51  ;;  %v2510_v51 = vld [vmem:[%s4424_s1 + $0x348] sm:$0xff] }
  0x52   : > { %620 = vmatprep.mubr.f32.mxu1 %v4439_v60  ;;  %2460 = vmatmul.mubr.msk.f32.gmra.mxu0 %vm164_vm0, %v2432_v52  ;;  %v2509_v52 = vld [vmem:[%s4424_s1 + $0x340] sm:$0xff] }
  0x53   : > { %702 = vmatprep.subr.mxu0 %v2520_v53  ;;  %486 = vmatprep.mubr.f32.mxu0 %v4439_v60  ;;  %v2508_v53 = vld [vmem:[%s4424_s1 + $0x338] sm:$0xff] }
  0x54   : > { %703 = vmatpush1.msra.mxu0 %v2519_v54  ;;  %2493 = vmatmul.mubr.msk.f32.gmra.mxu1 %vm164_vm0, %v2465_v55  ;;  %v2507_v54 = vld [vmem:[%s4424_s1 + $0x330] sm:$0xff]  ;;  %v2506_v55 = vld [vmem:[%s4424_s1 + $0x328] sm:$0xff] }
  0x55   : > { %704 = vmatprep.subr.mxu0 %v2518_v56  ;;  %626 = vmatprep.mubr.f32.mxu1 %v4439_v60  ;;  %v2505_v56 = vld [vmem:[%s4424_s1 + $0x320] sm:$0xff] }
  0x56   : > { %705 = vmatpush1.msra.mxu0 %v2517_v57  ;;  %906 = vmatprep.subr.mxu1 %v4439_v60  ;;  %v2504_v57 = vld [vmem:[%s4424_s1 + $0x318] sm:$0xff] }
  0x57   : > { %2461 = vmatmul.mubr.msk.f32.gmra.mxu0 %vm164_vm0, %v2433_v58  ;;  %706 = vmatprep.subr.mxu0 %v2516_v59  ;;  %v2503_v58 = vld [vmem:[%s4424_s1 + $0x310] sm:$0xff]  ;;  %v2502_v59 = vld [vmem:[%s4424_s1 + $0x308] sm:$0xff] }
  0x58   : > { %707 = vmatpush1.msra.mxu0 %v2515_v61  ;;  %2494 = vmatmul.mubr.msk.f32.gmra.mxu1 %vm164_vm0, %v2466_v62  ;;  %v2501_v61 = vld [vmem:[%s4424_s1 + $0x300] sm:$0xff] }
  0x59   : > { %708 = vmatprep.subr.mxu0 %v2514_v63  ;;  %492 = vmatprep.mubr.f32.mxu0 %v4439_v60  ;;  %v2497_v62 = vld [vmem:[%s3328_s28 + $0x4] sm:$0xff]  ;;  %v2498_v63 = vld [vmem:[%s3328_s28 + $0xc] sm:$0xff] }
  0x5a   : > { %709 = vmatpush1.msra.mxu0 %v2513_v46  ;;  %632 = vmatprep.mubr.f32.mxu1 %v4439_v60  ;;  %v2499_v46 = vld [vmem:[%s3328_s28 + $0x14] sm:$0xff] }
  0x5b   : > { %2462 = vmatmul.mubr.msk.f32.gmra.mxu0 %vm164_vm0, %v2434_v47  ;;  %710 = vmatprep.subr.mxu0 %v2512_v48  ;;  %v2500_v47 = vld [vmem:[%s3328_s28 + $0x1c] sm:$0xf]  ;;  %s2860_s28 = smov 127  }
  0x5c   : > { %711 = vmatpush1.msra.mxu0 %v2511_v49  ;;  %2495 = vmatmul.mubr.msk.f32.gmra.mxu1 %vm164_vm0, %v2467_v50 }
  0x5d   : > { %712 = vmatprep.subr.mxu0 %v2510_v51  ;;  %754 = vmatprep.mubr.f32.mxu0 %v4439_v60 }
  0x5e   : > { %713 = vmatpush1.msra.mxu0 %v2509_v52  ;;  %907 = vmatpush1.msra.mxu1 %v4469_v19 }
  0x5f   : > { %714 = vmatprep.subr.mxu0 %v2508_v53  ;;  %908 = vmatprep.subr.mxu1 %v4439_v60 }
  0x60   : > { %715 = vmatpush1.msra.mxu0 %v2507_v54  ;;  %909 = vmatpush1.msra.mxu1 %v4470_v18 }
  0x61   : > { %716 = vmatprep.subr.mxu0 %v2506_v55  ;;  %910 = vmatprep.subr.mxu1 %v4439_v60 }
  0x62   : > { %717 = vmatpush1.msra.mxu0 %v2505_v56  ;;  %911 = vmatpush1.msra.mxu1 %v4471_v17 }
  0x63   : > { %718 = vmatprep.subr.mxu0 %v2504_v57  ;;  %912 = vmatprep.subr.mxu1 %v4439_v60 }
  0x64   : > { %719 = vmatpush1.msra.mxu0 %v2503_v58  ;;  %913 = vmatpush1.msra.mxu1 %v4472_v16 }
  0x65   : > { %720 = vmatprep.subr.mxu0 %v2502_v59  ;;  %914 = vmatprep.subr.mxu1 %v4439_v60 }
  0x66   : > { %721 = vmatpush1.msra.mxu0 %v2501_v61  ;;  %915 = vmatpush1.msra.mxu1 %v4473_v15 }
  0x67   : > { %2525 = vmatmul.mubr.msk.f32.vlgmr.msra.gmra.mxu0 %vm164_vm0, %v2497_v62  ;;  %916 = vmatprep.subr.mxu1 %v4439_v60 }
  0x68   : > { %760 = vmatprep.mubr.f32.mxu0 %v4439_v60  ;;  %917 = vmatpush1.msra.mxu1 %v4474_v14 }
  0x69   : > { %918 = vmatprep.subr.mxu1 %v4439_v60 }
  0x6a   : > { %919 = vmatpush1.msra.mxu1 %v4475_v13 }
  0x6b   : > { %2526 = vmatmul.mubr.msk.f32.gmra.mxu0 %vm164_vm0, %v2498_v63  ;;  %920 = vmatprep.subr.mxu1 %v4439_v60 }
  0x6c   : > { %766 = vmatprep.mubr.f32.mxu0 %v4439_v60  ;;  %921 = vmatpush1.msra.mxu1 %v4476_v12 }
  0x6d   : > { %922 = vmatprep.subr.mxu1 %v4439_v60 }
  0x6e   : > { %923 = vmatpush1.msra.mxu1 %v4477_v11 }
  0x6f   : > { %2527 = vmatmul.mubr.msk.f32.gmra.mxu0 %vm164_vm0, %v2499_v46  ;;  %924 = vmatprep.subr.mxu1 %v4439_v60 }
  0x70   : > { %772 = vmatprep.mubr.f32.mxu0 %v4439_v60  ;;  %925 = vmatpush1.msra.mxu1 %v4478_v10 }
  0x71   : > { %926 = vmatprep.subr.mxu1 %v4439_v60 }
  0x72   : > { %927 = vmatpush1.msra.mxu1 %v4479_v9  ;;  %v4442_v9 = vlaneseq }
  0x73   : > { %2528 = vmatmul.mubr.msk.f32.gmra.mxu0 %vm164_vm0, %v2500_v47  ;;  %928 = vmatprep.subr.mxu1 %v4439_v60  ;;  %vm1895_vm0 = vcmask 916480  }
  0x74   : > { %929 = vmatpush1.msra.mxu1 %v4480_v8  ;;  %v3656_v12 = vshrl.u32 %v4442_v9, 7  ;;  %2740 = vmatprep.mubr.msk.f32.mxu0 %vm991_vm4, %v2964_v2  ;;  %v1987_v2 = vld [vmem:[%s4432_s9 + $0x170] sm:$0xff] (%p99_p0) }
  0x75   : > { %930 = vmatprep.subr.mxu1 %v4439_v60 }
  0x76   : > { %931 = vmatpush1.msra.mxu1 %v4481_v7  ;;  %v4443_v18 = vsub.s32 0, %v3656_v12 }
  0x77   : > { %932 = vmatprep.subr.mxu1 %v4439_v60 }
  0x78   : > { %933 = vmatpush1.msra.mxu1 %v4482_v6 }
  0x79   : > { %934 = vmatprep.subr.mxu1 %v4439_v60 }
  0x7a   : > { %935 = vmatpush1.msra.mxu1 %v4483_v5 }
  0x7b   : > { %936 = vmatprep.subr.mxu1 %v4439_v60 }
  0x7c   : > { %937 = vmatpush1.msra.mxu1 %v4484_v4 }
  0x7d   : > { %960 = vmatprep.subr.mxu1 %v4439_v60 }
  0x7e   : > { %2529 = vmatpush2.msk.msra.mxu1 %vm814_vm1, %v4485_v24 }
  0x7f   : > { %962 = vmatprep.subr.mxu1 %v4439_v60 }
  0x80   : > { %963 = vmatpush2.msra.mxu1 %v4486_v23  ;;  %v4444_v23 = vsub.s32 1, %v3656_v12 }
  0x81   : > { %964 = vmatprep.subr.mxu1 %v4439_v60 }
  0x82   : > { %965 = vmatpush2.msra.mxu1 %v4487_v22 }
  0x83   : > { %966 = vmatprep.subr.mxu1 %v4439_v60 }
  0x84   : > { %967 = vmatpush2.msra.mxu1 %v4488_v21 }
  0x85   : > { %968 = vmatprep.subr.mxu1 %v4439_v60 }
  0x86   : > { %969 = vmatpush2.msra.mxu1 %v4489_v20 }
  0xee   : > { %v243_v48 = vpop.f32.mrf.mxu0 }
  0xef   : > { %v344_v49 = vpop.f32.mrf.mxu1 }
  0xf0   : > { %v245_v50 = vpop.f32.mrf.mxu0  ;;  %v345_v13 = vadd.f32 %v344_v49, %v243_v48  ;;  %v791_v48 = vrot.slane %v2954_v0, %v4443_v18 }
  0xf1   : > { %v346_v52 = vpop.f32.mrf.mxu1 }
  0xf2   : > { %v347_v16 = vadd.f32 %v346_v52, %v245_v50 }
  0xfa   : > { %v249_v51 = vpop.f32.mrf.mxu0 }
  0xfb   : > { %v350_v54 = vpop.f32.mrf.mxu1 }
  0xfc   : > { %v251_v53 = vpop.f32.mrf.mxu0  ;;  %v351_v19 = vadd.f32 %v350_v54, %v249_v51 }
  0xfd   : > { %v352_v56 = vpop.f32.mrf.mxu1 }
  0xfe   : > { %v353_v24 = vadd.f32 %v352_v56, %v251_v53 }
 0x100   : > { %v255_v55 = vpop.f32.mrf.mxu0 }
 0x101   : > { %v356_v58 = vpop.f32.mrf.mxu1 }
 0x102   : > { %v257_v57 = vpop.f32.mrf.mxu0  ;;  %v357_v49 = vadd.f32 %v356_v58, %v255_v55 }
 0x103   : > { %v358_v62 = vpop.f32.mrf.mxu1 }
 0x106   : > { %v261_v59 = vpop.f32.mrf.mxu0 }
 0x107   : > { %v362_v46 = vpop.f32.mrf.mxu1 }
 0x108   : > { %v263_v61 = vpop.f32.mrf.mxu0 }
 0x109   : > { %v364_v60 = vpop.f32.mrf.mxu1 }
 0x10d   : > { %v476_v63 = vpop.f32.mrf.mxu0 }
 0x10e   : > { %v499_v17 = vadd.f32 %v476_v63, %v345_v13  ;;  %v359_v63 = vadd.f32 %v358_v62, %v257_v57 }
 0x10f   : > { %v478_v47 = vpop.f32.mrf.mxu0 }
 0x110   : > { %v616_v5 = vpop.f32.mrf.mxu1  ;;  %v500_v20 = vadd.f32 %v478_v47, %v347_v16  ;;  %v795_v16 = vrot.slane %v2954_v0, %v4444_v23  ;;  %v1955_v0 = vld [vmem:[%s4432_s9 + $0x70] sm:$0xff] (%p99_p0) }
 0x111   : > { %v639_v25 = vadd.f32 %v616_v5, %v499_v17 }
 0x112   : > { %v482_v4 = vpop.f32.mrf.mxu0  ;;  %v618_v7 = vpop.f32.mrf.mxu1 }
 0x113   : > { %v501_v1 = vadd.f32 %v482_v4, %v351_v19  ;;  %v640_v9 = vadd.f32 %v618_v7, %v500_v20  ;;  %v363_v4 = vadd.f32 %v362_v46, %v261_v59  ;;  %v365_v7 = vadd.f32 %v364_v60, %v263_v61 }
 0x114   : > { %v484_v6 = vpop.f32.mrf.mxu0  ;;  %v622_v10 = vpop.f32.mrf.mxu1 }
 0x115   : > { %v502_v50 = vadd.f32 %v484_v6, %v353_v24  ;;  %v641_v54 = vadd.f32 %v622_v10, %v501_v1 }
 0x116   : > { %v624_v14 = vpop.f32.mrf.mxu1 }
 0x117   : > { %v488_v8 = vpop.f32.mrf.mxu0  ;;  %v642_v56 = vadd.f32 %v624_v14, %v502_v50 }
 0x118   : > { %v628_v21 = vpop.f32.mrf.mxu1  ;;  %v503_v53 = vadd.f32 %v488_v8, %v357_v49 }
 0x119   : > { %v490_v11 = vpop.f32.mrf.mxu0 }
 0x11a   : > { %v630_v13 = vpop.f32.mrf.mxu1  ;;  %v504_v17 = vadd.f32 %v490_v11, %v359_v63 }
 0x11b   : > { %v494_v15 = vpop.f32.mrf.mxu0 }
 0x11c   : > { %v634_v47 = vpop.f32.mrf.mxu1  ;;  %v505_v6 = vadd.f32 %v494_v15, %v363_v4  ;;  %v644_v58 = vadd.f32 %v630_v13, %v504_v17 }
 0x11d   : > { %v496_v22 = vpop.f32.mrf.mxu0 }
 0x11e   : > { %v506_v62 = vadd.f32 %v496_v22, %v365_v7  ;;  %v636_v1 = vpop.f32.mrf.mxu1  ;;  %v645_v59 = vadd.f32 %v634_v47, %v505_v6 }
 0x120   : > { %v646_v61 = vadd.f32 %v636_v1, %v506_v62 }
 0x127   : > { %v756_v42 = vpop.f32.mrf.mxu0 }
 0x128   : > { %v779_v52 = vadd.f32 %v756_v42, %v639_v25  ;;  %v643_v25 = vadd.f32 %v628_v21, %v503_v53 }
 0x129   : > { %v758_v51 = vpop.f32.mrf.mxu0 }
 0x12a   : > { %v780_v5 = vadd.f32 %v758_v51, %v640_v9  ;;  %v798_v18 = vadd.f32 %v791_v48, %v779_v52 }
 0x12b   : > { %v762_v19 = vpop.f32.mrf.mxu0 }
 0x12c   : > { %v781_v55 = vadd.f32 %v762_v19, %v641_v54  ;;  %v799_v20 = vadd.f32 %v795_v16, %v780_v5  ;;  %v815_v8 = vrot.slane %v798_v18, 1 }
 0x12d   : > { %v764_v24 = vpop.f32.mrf.mxu0 }
 0x12e   : > { %v800_v42 = vadd.f32 %v791_v48, %v781_v55  ;;  %v782_v57 = vadd.f32 %v764_v24, %v642_v56  ;;  %v818_v14 = vrot.slane %v799_v20, 1 }
 0x12f   : > { %v768_v23 = vpop.f32.mrf.mxu0 }
 0x130   : > { %v816_v9 = vrot.slane %v800_v42, 1  ;;  %v801_v10 = vadd.f32 %v795_v16, %v782_v57  ;;  %v783_v11 = vadd.f32 %v768_v23, %v643_v25 }
 0x131   : > { %v770_v46 = vpop.f32.mrf.mxu0 }
 0x132   : > { %v819_v49 = vrot.slane %v801_v10, 1  ;;  %v802_v50 = vadd.f32 %v791_v48, %v783_v11  ;;  %v784_v60 = vadd.f32 %v770_v46, %v644_v58  ;;  %v817_v15 = vsel %vm814_vm1, %v815_v8, %v816_v9 }
 0x133   : > { %v774_v21 = vpop.f32.mrf.mxu0  ;;  %v837_v52 = vmax.f32 %v798_v18, %v817_v15 }
 0x134   : > { %v821_v63 = vrot.slane %v802_v50, 1  ;;  %v803_v13 = vadd.f32 %v795_v16, %v784_v60  ;;  %v785_v22 = vadd.f32 %v774_v21, %v645_v59  ;;  %v820_v51 = vsel %vm814_vm1, %v818_v14, %v819_v49 }
 0x135   : > { %v776_v54 = vpop.f32.mrf.mxu0  ;;  %853 = vrot.lane.b32.xlu0 %v837_v52, %s2860_s28  ;;  %v838_v19 = vmax.f32 %v799_v20, %v820_v51  ;;  %v1097_v51 = vld [vmem:[%s4428_s5 + $0xa0] sm:$0xf] }
 0x136   : > { %v823_v23 = vrot.slane %v803_v13, 1  ;;  %v804_v53 = vadd.f32 %v791_v48, %v785_v22  ;;  %v786_v5 = vadd.f32 %v776_v54, %v646_v61  ;;  %v822_v4 = vsel %vm814_vm1, %v816_v9, %v821_v63  ;;  %v1098_v22 = vld [vmem:[%s4428_s5 + $0xa8] sm:$0xf]  ;;  %v1096_v54 = vld [vmem:[%s4428_s5 + $0x98] sm:$0xff] }
 0x137   : > { %v839_v17 = vmax.f32 %v800_v42, %v822_v4  ;;  %2563 = vmatprep.subr.msk.mxu1 %vm1132_vm5, %v1098_v22  ;;  %v1092_v4 = vld [vmem:[%s4428_s5 + $0x78] sm:$0xff] }
 0x138   : > { %v825_v56 = vrot.slane %v804_v53, 1  ;;  %v805_v47 = vadd.f32 %v795_v16, %v786_v5  ;;  %v824_v18 = vsel %vm814_vm1, %v819_v49, %v823_v23  ;;  %v1093_v5 = vld [vmem:[%s4428_s5 + $0x80] sm:$0xff]  ;;  %v2546_v22 = vld [vmem:[%s4428_s5 + $0xf8] sm:$0xff] }
 0x139   : > { %857 = vrot.lane.b32.xlu1 %v839_v17, %s2860_s28  ;;  %855 = vrot.lane.b32.xlu0 %v838_v19, %s2860_s28  ;;  %v840_v6 = vmax.f32 %v801_v10, %v824_v18  ;;  %v1087_v18 = vld [vmem:[%s4428_s5 + $0x50] sm:$0xff] }
 0x13a   : > { %v827_v55 = vrot.slane %v805_v47, 1  ;;  %v826_v7 = vsel %vm814_vm1, %v821_v63, %v825_v56  ;;  %v843_v25 = vmax.f32 %v804_v53, %v825_v56  ;;  %v1094_v53 = vld [vmem:[%s4428_s5 + $0x88] sm:$0xff]  ;;  %v1089_v56 = vld [vmem:[%s4428_s5 + $0x60] sm:$0xff] }
 0x13b   : > { %v841_v24 = vmax.f32 %v802_v50, %v826_v7  ;;  %v1085_v7 = vld [vmem:[%s4428_s5 + $0x40] sm:$0xff] }
 0x13c   : > { %v828_v48 = vsel %vm814_vm1, %v823_v23, %v827_v55  ;;  %v844_v16 = vmax.f32 %v805_v47, %v827_v55  ;;  %v1095_v23 = vld [vmem:[%s4428_s5 + $0x90] sm:$0xff]  ;;  %v1088_v47 = vld [vmem:[%s4428_s5 + $0x58] sm:$0xff]  ;;  %v1086_v55 = vld [vmem:[%s4428_s5 + $0x48] sm:$0xff] }
 0x13d   : > { %859 = vrot.lane.b32.xlu1 %v840_v6, %s2860_s28  ;;  %861 = vrot.lane.b32.xlu0 %v841_v24, %s2860_s28  ;;  %v842_v20 = vmax.f32 %v803_v13, %v828_v48  ;;  %v4490_v13 = vmov 0.0   ;;  %v1082_v48 = vld [vmem:[%s4428_s5 + $0x28] sm:$0xff] }
 0x141   : > { %863 = vrot.lane.b32.xlu1 %v842_v20, %s2860_s28  ;;  %865 = vrot.lane.b32.xlu0 %v843_v25, %s2860_s28 }
 0x145   : > { %867 = vrot.lane.b32.xlu1 %v844_v16, %s2860_s28 }
 0x1a7   : > { %v854_v42 = vpop.permute.xlu0 %853 }
 0x1ab   : > { %v858_v57 = vpop.permute.xlu1 %857  ;;  %v856_v58 = vpop.permute.xlu0 %855 }
 0x1ac   : > { %v870_v62 = vsel %vm869_vm2, %v854_v42, %v856_v58  ;;  %v883_v1 = vmax.f32 %v838_v19, %v856_v58  ;;  %v1090_v19 = vld [vmem:[%s4428_s5 + $0x68] sm:$0xff] }
 0x1ad   : > { %v882_v8 = vmax.f32 %v837_v52, %v870_v62 }
 0x1ae   : > { %2530 = vmatprep.mubr.msk.f32.mxu1 %vm890_vm3, %v883_v1 }
 0x1af   : > { %v860_v9 = vpop.permute.xlu1 %859  ;;  %971 = vmatmul.mubr.f32.vlgmr.msra.gmra.mxu1 %v882_v8  ;;  %v862_v14 = vpop.permute.xlu0 %861 }
 0x1b0   : > { %v871_v10 = vsel %vm869_vm2, %v858_v57, %v860_v9  ;;  %v885_v11 = vmax.f32 %v840_v6, %v860_v9  ;;  %2564 = vmatpush1.msk.msra.mxu1 %vm1132_vm5, %v1097_v51  ;;  %v1084_v6 = vld [vmem:[%s4428_s5 + $0x38] sm:$0xff]  ;;  %v2545_v51 = vld [vmem:[%s4428_s5 + $0xf0] sm:$0xff] }
 0x1b1   : > { %v884_v59 = vmax.f32 %v839_v17, %v871_v10  ;;  %1238 = vmatprep.subr.mxu1 %v1096_v54  ;;  %v1091_v17 = vld [vmem:[%s4428_s5 + $0x70] sm:$0xff]  ;;  %v2544_v54 = vld [vmem:[%s4428_s5 + $0xe8] sm:$0xff] }
 0x1b2   : > { %2531 = vmatprep.mubr.msk.f32.mxu1 %vm890_vm3, %v885_v11  ;;  %1239 = vmatpush1.msra.mxu1 %v1095_v23  ;;  %v2558_v11 = vld [vmem:[%s4428_s5 + $0x158] sm:$0xf]  ;;  %v2543_v23 = vld [vmem:[%s4428_s5 + $0xe0] sm:$0xff] }
 0x1b3   : > { %v864_v46 = vpop.permute.xlu1 %863  ;;  %976 = vmatmul.mubr.f32.gmra.mxu1 %v884_v59  ;;  %v866_v15 = vpop.permute.xlu0 %865  ;;  %1240 = vmatprep.subr.mxu1 %v1094_v53  ;;  %v2557_v59 = vld [vmem:[%s4428_s5 + $0x150] sm:$0xf]  ;;  %v2542_v53 = vld [vmem:[%s4428_s5 + $0xd8] sm:$0xff] }
 0x1b4   : > { %v872_v49 = vsel %vm869_vm2, %v862_v14, %v864_v46  ;;  %v887_v50 = vmax.f32 %v842_v20, %v864_v46  ;;  %1241 = vmatpush1.msra.mxu1 %v1093_v5  ;;  %v1081_v20 = vld [vmem:[%s4428_s5 + $0x20] sm:$0xff]  ;;  %v2556_v14 = vld [vmem:[%s4428_s5 + $0x148] sm:$0xff]  ;;  %v2541_v5 = vld [vmem:[%s4428_s5 + $0xd0] sm:$0xff] }
 0x1b5   : > { %v886_v60 = vmax.f32 %v841_v24, %v872_v49  ;;  %1242 = vmatprep.subr.mxu1 %v1092_v4  ;;  %v1083_v24 = vld [vmem:[%s4428_s5 + $0x30] sm:$0xff]  ;;  %v2555_v46 = vld [vmem:[%s4428_s5 + $0x140] sm:$0xff]  ;;  %v2554_v49 = vld [vmem:[%s4428_s5 + $0x138] sm:$0xff] }
 0x1b6   : > { %2532 = vmatprep.mubr.msk.f32.mxu1 %vm890_vm3, %v887_v50  ;;  %1243 = vmatpush1.msra.mxu1 %v1091_v17  ;;  %v2553_v50 = vld [vmem:[%s4428_s5 + $0x130] sm:$0xff]  ;;  %v1078_v4 = vld [vmem:[%s4428_s5 + $0x8] sm:$0xff] }
 0x1b7   : > { %v868_v61 = vpop.permute.xlu1 %867  ;;  %981 = vmatmul.mubr.f32.gmra.mxu1 %v886_v60  ;;  %1244 = vmatprep.subr.mxu1 %v1090_v19  ;;  %v2552_v60 = vld [vmem:[%s4428_s5 + $0x128] sm:$0xff]  ;;  %v1077_v19 = vld [vmem:[%s4428_s5] sm:$0xff] }
 0x1b8   : > { %v873_v21 = vsel %vm869_vm2, %v866_v15, %v868_v61  ;;  %v889_v52 = vmax.f32 %v844_v16, %v868_v61  ;;  %1245 = vmatpush1.msra.mxu1 %v1089_v56  ;;  %v1079_v16 = vld [vmem:[%s4428_s5 + $0x10] sm:$0xff]  ;;  %v2551_v15 = vld [vmem:[%s4428_s5 + $0x120] sm:$0xff]  ;;  %v2550_v61 = vld [vmem:[%s4428_s5 + $0x118] sm:$0xff] }
 0x1b9   : > { %v888_v63 = vmax.f32 %v843_v25, %v873_v21  ;;  %1246 = vmatprep.subr.mxu1 %v1088_v47  ;;  %v1080_v25 = vld [vmem:[%s4428_s5 + $0x18] sm:$0xff]  ;;  %v2549_v21 = vld [vmem:[%s4428_s5 + $0x110] sm:$0xff]  ;;  %v2540_v17 = vld [vmem:[%s4428_s5 + $0xc8] sm:$0xff] }
 0x1ba   : > { %2533 = vmatprep.mubr.msk.f32.mxu1 %vm890_vm3, %v889_v52  ;;  %1247 = vmatpush1.msra.mxu1 %v1087_v18  ;;  %v2548_v52 = vld [vmem:[%s4428_s5 + $0x108] sm:$0xff]  ;;  %v2539_v56 = vld [vmem:[%s4428_s5 + $0xc0] sm:$0xff]  ;;  %v2614_v47 = vld [vmem:[%s4428_s5 + $0x2b8] sm:$0xf]  ;;  %vm2019_vm3 = vcmask (%p99_p0), 130048  }
 0x1bb   : > { %986 = vmatmul.mubr.f32.gmra.mxu1 %v888_v63  ;;  %1248 = vmatprep.subr.mxu1 %v1086_v55  ;;  %v2547_v63 = vld [vmem:[%s4428_s5 + $0x100] sm:$0xff]  ;;  %v2538_v18 = vld [vmem:[%s4428_s5 + $0xb8] sm:$0xff]  ;;  %v2537_v55 = vld [vmem:[%s4428_s5 + $0xb0] sm:$0xff] }
 0x1bc   : > { %1290 = vmatprep.mubr.f32.mxu1 %v4490_v13  ;;  %1249 = vmatpush1.msra.mxu1 %v1085_v7  ;;  %v2588_v7 = vld [vmem:[%s4428_s5 + $0x208] sm:$0xf] }
 0x1bd   : > { %1250 = vmatprep.subr.mxu1 %v1084_v6 }
 0x1be   : > { %1251 = vmatpush1.msra.mxu1 %v1083_v24  ;;  %v2613_v24 = vld [vmem:[%s4428_s5 + $0x2b0] sm:$0xf] }
 0x1bf   : > { %1252 = vmatprep.subr.mxu1 %v1082_v48 }
 0x1c0   : > { %1253 = vmatpush1.msra.mxu1 %v1081_v20  ;;  %v2612_v20 = vld [vmem:[%s4428_s5 + $0x2a8] sm:$0xff] }
 0x1c1   : > { %1254 = vmatprep.subr.mxu1 %v1080_v25 }
 0x1c2   : > { %1255 = vmatpush1.msra.mxu1 %v1079_v16 }
 0x1c3   : > { %1256 = vmatprep.subr.mxu1 %v1078_v4  ;;  %v2598_v4 = vld [vmem:[%s4428_s5 + $0x238] sm:$0xff] }
 0x1c4   : > { %1257 = vmatpush1.msra.mxu1 %v1077_v19  ;;  %v2597_v19 = vld [vmem:[%s4428_s5 + $0x230] sm:$0xff] }
 0x1c5   : > { %2615 = vmatprep.subr.msk.mxu1 %vm1132_vm5, %v2614_v47  ;;  %v2596_v47 = vld [vmem:[%s4428_s5 + $0x228] sm:$0xff] }
 0x26f   : > { %v972_v42 = vpop.f32.mrf.mxu1 }
 0x271   : > { %v974_v57 = vpop.f32.mrf.mxu1 }
 0x272   : > { %v2587_v57 = vld [vmem:[%s4428_s5 + $0x200] sm:$0xf] }
 0x273   : > { %v977_v58 = vpop.f32.mrf.mxu1 }
 0x275   : > { %v979_v62 = vpop.f32.mrf.mxu1 }
 0x277   : > { %v982_v1 = vpop.f32.mrf.mxu1 }
 0x279   : > { %v984_v8 = vpop.f32.mrf.mxu1 }
 0x27a   : > { %v2609_v8 = vld [vmem:[%s4428_s5 + $0x290] sm:$0xff] }
 0x27b   : > { %v987_v9 = vpop.f32.mrf.mxu1 }
 0x27c   : > { %2732 = vmatprep.subr.msk.mxu0 %vm998_vm6, %v987_v9 }
 0x27d   : > { %v989_v10 = vpop.f32.mrf.mxu1  ;;  %2733 = vmatpush3.msk.msra.mxu0 %vm998_vm6, %v987_v9  ;;  %v2585_v9 = vld [vmem:[%s4428_s5 + $0x1f0] sm:$0xff]  ;;  %vm2354_vm6 = vcmask (%p99_p0), 74752  }
 0x27e   : > { %2734 = vmatprep.subr.mxu0 %v982_v1  ;;  %v2608_v10 = vld [vmem:[%s4428_s5 + $0x288] sm:$0xff] }
 0x27f   : > { %2735 = vmatpush3.msra.mxu0 %v982_v1  ;;  %v2586_v1 = vld [vmem:[%s4428_s5 + $0x1f8] sm:$0xff] }
 0x280   : > { %2736 = vmatprep.subr.mxu0 %v977_v58 }
 0x281   : > { %2737 = vmatpush3.msra.mxu0 %v977_v58  ;;  %v2610_v58 = vld [vmem:[%s4428_s5 + $0x298] sm:$0xff] }
 0x282   : > { %2738 = vmatprep.subr.mxu0 %v972_v42 }
 0x283   : > { %2739 = vmatpush3.msra.mxu0 %v972_v42  ;;  %v2611_v42 = vld [vmem:[%s4428_s5 + $0x2a0] sm:$0xff] }
 0x284   : > { %2741 = vmatmul.mubr.msk.f32.vlgmr.msra.gmra.mxu0 %vm991_vm4, %v2969_v3  ;;  %2559 = vmatprep.subr.msk.mxu0 %vm1132_vm5, %v2558_v11  ;;  %v2584_v11 = vld [vmem:[%s4428_s5 + $0x1e8] sm:$0xff]  ;;  %vm2869_vm4 = vmmov (%p99_p0), 0  }
 0x285   : > { %2560 = vmatpush1.msk.msra.mxu0 %vm1132_vm5, %v2557_v59  ;;  %1203 = vmatprep.mubr.f32.mxu0 %v4490_v13  ;;  %v2607_v59 = vld [vmem:[%s4428_s5 + $0x280] sm:$0xff]  ;;  %v1970_v3 = vld [vmem:[%s4432_s9 + $0xe8] sm:$0xff] (%p99_p0) }
 0x286   : > { %1151 = vmatprep.subr.mxu0 %v2556_v14  ;;  %v2606_v14 = vld [vmem:[%s4428_s5 + $0x278] sm:$0xff] }
 0x287   : > { %1152 = vmatpush1.msra.mxu0 %v2555_v46  ;;  %v2583_v46 = vld [vmem:[%s4428_s5 + $0x1e0] sm:$0xff] }
 0x288   : > { %1153 = vmatprep.subr.mxu0 %v2554_v49  ;;  %v2605_v49 = vld [vmem:[%s4428_s5 + $0x270] sm:$0xff] }
 0x289   : > { %1154 = vmatpush1.msra.mxu0 %v2553_v50  ;;  %v2582_v50 = vld [vmem:[%s4428_s5 + $0x1d8] sm:$0xff] }
 0x28a   : > { %1155 = vmatprep.subr.mxu0 %v2552_v60  ;;  %v2604_v60 = vld [vmem:[%s4428_s5 + $0x268] sm:$0xff] }
 0x28b   : > { %1156 = vmatpush1.msra.mxu0 %v2551_v15  ;;  %v2581_v15 = vld [vmem:[%s4428_s5 + $0x1d0] sm:$0xff] }
 0x28c   : > { %1157 = vmatprep.subr.mxu0 %v2550_v61  ;;  %v2603_v61 = vld [vmem:[%s4428_s5 + $0x260] sm:$0xff] }
 0x28d   : > { %1158 = vmatpush1.msra.mxu0 %v2549_v21  ;;  %v2580_v21 = vld [vmem:[%s4428_s5 + $0x1c8] sm:$0xff] }
 0x28e   : > { %1159 = vmatprep.subr.mxu0 %v2548_v52  ;;  %v2602_v52 = vld [vmem:[%s4428_s5 + $0x258] sm:$0xff] }
 0x28f   : > { %1160 = vmatpush1.msra.mxu0 %v2547_v63  ;;  %v2579_v63 = vld [vmem:[%s4428_s5 + $0x1c0] sm:$0xff] }
 0x290   : > { %1161 = vmatprep.subr.mxu0 %v2546_v22  ;;  %v2601_v22 = vld [vmem:[%s4428_s5 + $0x250] sm:$0xff] }
 0x291   : > { %1162 = vmatpush1.msra.mxu0 %v2545_v51  ;;  %v2578_v51 = vld [vmem:[%s4428_s5 + $0x1b8] sm:$0xff] }
 0x292   : > { %1163 = vmatprep.subr.mxu0 %v2544_v54  ;;  %v2600_v54 = vld [vmem:[%s4428_s5 + $0x248] sm:$0xff] }
 0x293   : > { %1164 = vmatpush1.msra.mxu0 %v2543_v23  ;;  %v2577_v23 = vld [vmem:[%s4428_s5 + $0x1b0] sm:$0xff] }
 0x294   : > { %1165 = vmatprep.subr.mxu0 %v2542_v53  ;;  %v2599_v53 = vld [vmem:[%s4428_s5 + $0x240] sm:$0xff] }
 0x295   : > { %1166 = vmatpush1.msra.mxu0 %v2541_v5  ;;  %v2576_v5 = vld [vmem:[%s4428_s5 + $0x1a8] sm:$0xff] }
 0x296   : > { %1167 = vmatprep.subr.mxu0 %v2540_v17  ;;  %v2575_v17 = vld [vmem:[%s4428_s5 + $0x1a0] sm:$0xff] }
 0x297   : > { %1168 = vmatpush1.msra.mxu0 %v2539_v56  ;;  %v2574_v56 = vld [vmem:[%s4428_s5 + $0x198] sm:$0xff] }
 0x298   : > { %1169 = vmatprep.subr.mxu0 %v2538_v18  ;;  %v2573_v18 = vld [vmem:[%s4428_s5 + $0x190] sm:$0xff] }
 0x299   : > { %1170 = vmatpush1.msra.mxu0 %v2537_v55  ;;  %v2595_v55 = vld [vmem:[%s4428_s5 + $0x220] sm:$0xff] }
 0x29a   : > { %2589 = vmatprep.subr.msk.mxu0 %vm1132_vm5, %v2588_v7  ;;  %v2572_v7 = vld [vmem:[%s4428_s5 + $0x188] sm:$0xff] }
 0x344   : > { %v3838_v6 = vpop.f32.mrf.mxu0 }
 0x345   : > { %v1125_v25 = vrot.slane %v3838_v6, 1 }
 0x346   : > { %v3843_v48 = vpop.f32.mrf.mxu0 }
 0x347   : > { %v1124_v16 = vrot.slane %v3843_v48, 1  ;;  %2565 = vmatmul.mubr.msk.f32.vlgmr.msra.gmra.mxu1 %vm1127_vm7, %v3843_v48 }
 0x348   : > { %2616 = vmatpush1.msk.msra.mxu1 %vm1132_vm5, %v2613_v24  ;;  %1296 = vmatprep.mubr.f32.mxu1 %v4490_v13  ;;  %v2594_v24 = vld [vmem:[%s4428_s5 + $0x218] sm:$0xff] }
 0x349   : > { %1470 = vmatprep.subr.mxu1 %v2612_v20  ;;  %v1126_v62 = vsel %vm814_vm1, %v1124_v16, %v1125_v25  ;;  %v1445_v20 = vrot.slane %v3843_v48, 3  ;;  %v2593_v16 = vld [vmem:[%s4428_s5 + $0x210] sm:$0xff] }
 0x34a   : > { %1471 = vmatpush1.msra.mxu1 %v2611_v42  ;;  %2561 = vmatmul.mubr.msk.f32.vlgmr.msra.gmra.mxu0 %vm1127_vm7, %v1126_v62  ;;  %v2570_v42 = vld [vmem:[%s4428_s5 + $0x178] sm:$0xff]  ;;  %v1327_v62 = vrot.slane %v3843_v48, 2 }
 0x34b   : > { %2590 = vmatpush1.msk.msra.mxu0 %vm1132_vm5, %v2587_v57  ;;  %1472 = vmatprep.subr.mxu1 %v2610_v58  ;;  %v1446_v57 = vrot.slane %v3838_v6, 3  ;;  %v2569_v58 = vld [vmem:[%s4428_s5 + $0x170] sm:$0xff] }
 0x34c   : > { %2566 = vmatmul.mubr.msk.f32.gmra.mxu1 %vm1127_vm7, %v3838_v6  ;;  %1352 = vmatprep.subr.mxu0 %v2586_v1  ;;  %v2568_v1 = vld [vmem:[%s4428_s5 + $0x168] sm:$0xff] }
 0x34d   : > { %1473 = vmatpush1.msra.mxu1 %v2609_v8  ;;  %1353 = vmatpush1.msra.mxu0 %v2585_v9  ;;  %v1447_v8 = vsel %vm1444_vm8, %v1445_v20, %v1446_v57  ;;  %v2567_v9 = vld [vmem:[%s4428_s5 + $0x160] sm:$0xff] }
 0x34e   : > { %1474 = vmatprep.subr.mxu1 %v2608_v10  ;;  %1209 = vmatprep.mubr.f32.mxu0 %v4490_v13  ;;  %v1328_v10 = vrot.slane %v3838_v6, 2 }
 0x34f   : > { %1354 = vmatprep.subr.mxu0 %v2584_v11  ;;  %1475 = vmatpush1.msra.mxu1 %v2607_v59  ;;  %v2640_v11 = vld [vmem:[%s4428_s5 + $0x368] sm:$0xf]  ;;  %v2639_v59 = vld [vmem:[%s4428_s5 + $0x360] sm:$0xf] }
 0x350   : > { %2562 = vmatmul.mubr.msk.f32.gmra.mxu0 %vm1127_vm7, %v1125_v25  ;;  %1476 = vmatprep.subr.mxu1 %v2606_v14  ;;  %v2571_v25 = vld [vmem:[%s4428_s5 + $0x180] sm:$0xff]  ;;  %v1329_v14 = vsel %vm1326_vm9, %v1327_v62, %v1328_v10 }
 0x351   : > { %1355 = vmatpush1.msra.mxu0 %v2583_v46  ;;  %1477 = vmatpush1.msra.mxu1 %v2605_v49  ;;  %v2638_v46 = vld [vmem:[%s4428_s5 + $0x358] sm:$0xff]  ;;  %v2637_v49 = vld [vmem:[%s4428_s5 + $0x350] sm:$0xff] }
 0x352   : > { %1356 = vmatprep.subr.mxu0 %v2582_v50  ;;  %1478 = vmatprep.subr.mxu1 %v2604_v60  ;;  %v2636_v50 = vld [vmem:[%s4428_s5 + $0x348] sm:$0xff]  ;;  %v2635_v60 = vld [vmem:[%s4428_s5 + $0x340] sm:$0xff] }
 0x353   : > { %1357 = vmatpush1.msra.mxu0 %v2581_v15  ;;  %1479 = vmatpush1.msra.mxu1 %v2603_v61  ;;  %v2634_v15 = vld [vmem:[%s4428_s5 + $0x338] sm:$0xff]  ;;  %v2633_v61 = vld [vmem:[%s4428_s5 + $0x330] sm:$0xff] }
 0x354   : > { %1358 = vmatprep.subr.mxu0 %v2580_v21  ;;  %1480 = vmatprep.subr.mxu1 %v2602_v52  ;;  %v2632_v21 = vld [vmem:[%s4428_s5 + $0x328] sm:$0xff]  ;;  %v2631_v52 = vld [vmem:[%s4428_s5 + $0x320] sm:$0xff] }
 0x355   : > { %1359 = vmatpush1.msra.mxu0 %v2579_v63  ;;  %1481 = vmatpush1.msra.mxu1 %v2601_v22  ;;  %v2630_v63 = vld [vmem:[%s4428_s5 + $0x318] sm:$0xff]  ;;  %v2629_v22 = vld [vmem:[%s4428_s5 + $0x310] sm:$0xff] }
 0x356   : > { %1360 = vmatprep.subr.mxu0 %v2578_v51  ;;  %1482 = vmatprep.subr.mxu1 %v2600_v54  ;;  %v2628_v51 = vld [vmem:[%s4428_s5 + $0x308] sm:$0xff]  ;;  %v2627_v54 = vld [vmem:[%s4428_s5 + $0x300] sm:$0xff] }
 0x357   : > { %1361 = vmatpush1.msra.mxu0 %v2577_v23  ;;  %1483 = vmatpush1.msra.mxu1 %v2599_v53  ;;  %v2626_v23 = vld [vmem:[%s4428_s5 + $0x2f8] sm:$0xff]  ;;  %v2625_v53 = vld [vmem:[%s4428_s5 + $0x2f0] sm:$0xff] }
 0x358   : > { %1362 = vmatprep.subr.mxu0 %v2576_v5  ;;  %1484 = vmatprep.subr.mxu1 %v2598_v4  ;;  %v2624_v5 = vld [vmem:[%s4428_s5 + $0x2e8] sm:$0xff]  ;;  %v2623_v4 = vld [vmem:[%s4428_s5 + $0x2e0] sm:$0xff] }
 0x359   : > { %1363 = vmatpush1.msra.mxu0 %v2575_v17  ;;  %1485 = vmatpush1.msra.mxu1 %v2597_v19  ;;  %v2622_v17 = vld [vmem:[%s4428_s5 + $0x2d8] sm:$0xff]  ;;  %v2621_v19 = vld [vmem:[%s4428_s5 + $0x2d0] sm:$0xff] }
 0x35a   : > { %1364 = vmatprep.subr.mxu0 %v2574_v56  ;;  %1486 = vmatprep.subr.mxu1 %v2596_v47  ;;  %v1562_v56 = vrot.slane %v3843_v48, 4  ;;  %v2620_v47 = vld [vmem:[%s4428_s5 + $0x2c8] sm:$0xff] }
 0x35b   : > { %1365 = vmatpush1.msra.mxu0 %v2573_v18  ;;  %1487 = vmatpush1.msra.mxu1 %v2595_v55  ;;  %v2619_v18 = vld [vmem:[%s4428_s5 + $0x2c0] sm:$0xff]  ;;  %v1563_v55 = vrot.slane %v3838_v6, 4 }
 0x35c   : > { %1366 = vmatprep.subr.mxu0 %v2572_v7  ;;  %1488 = vmatprep.subr.mxu1 %v2594_v24  ;;  %v4491_v6 = vld [vmem:[#allocation29_spill] sm:$0xff] }
 0x35d   : > { %1367 = vmatpush1.msra.mxu0 %v2571_v25  ;;  %1489 = vmatpush1.msra.mxu1 %v2593_v16  ;;  %v1564_v48 = vsel %vm1132_vm5, %v1562_v56, %v1563_v55 }
 0x35e   : > { %1368 = vmatprep.subr.mxu0 %v2570_v42  ;;  %1522 = vmatprep.mubr.f32.mxu1 %v4490_v13 }
 0x35f   : > { %1369 = vmatpush1.msra.mxu0 %v2569_v58  ;;  %2617 = vmatmul.mubr.msk.f32.vlgmr.msra.gmra.mxu1 %vm1127_vm7, %v1447_v8 }
 0x360   : > { %1370 = vmatprep.subr.mxu0 %v2568_v1  ;;  %1404 = vmatprep.mubr.f32.mxu0 %v4490_v13 }
 0x361   : > { %1371 = vmatpush1.msra.mxu0 %v2567_v9  ;;  %1528 = vmatprep.mubr.f32.mxu1 %v4490_v13 }
 0x362   : > { %2591 = vmatmul.mubr.msk.f32.vlgmr.msra.gmra.mxu0 %vm1127_vm7, %v1329_v14  ;;  %2641 = vmatprep.subr.msk.mxu0 %vm1132_vm5, %v2640_v11 }
 0x363   : > { %2618 = vmatmul.mubr.msk.f32.gmra.mxu1 %vm1127_vm7, %v1446_v57  ;;  %2642 = vmatpush1.msk.msra.mxu0 %vm1132_vm5, %v2639_v59 }
 0x364   : > { %1587 = vmatprep.subr.mxu0 %v2638_v46  ;;  %1410 = vmatprep.mubr.f32.mxu0 %v4490_v13 }
 0x365   : > { %1588 = vmatpush1.msra.mxu0 %v2637_v49  ;;  %1721 = vmatprep.subr.mxu1 %v4490_v13 }
 0x366   : > { %2592 = vmatmul.mubr.msk.f32.gmra.mxu0 %vm1127_vm7, %v1328_v10  ;;  %1589 = vmatprep.subr.mxu0 %v2636_v50 }
 0x367   : > { %1590 = vmatpush1.msra.mxu0 %v2635_v60  ;;  %1639 = vmatprep.mubr.f32.mxu0 %v4490_v13 }
 0x368   : > { %1591 = vmatprep.subr.mxu0 %v2634_v15  ;;  %1722 = vmatpush1.msra.mxu1 %v3159_v41  ;;  %v2868_v41 = vmov (%p99_p0), 1983009808  }
 0x369   : > { %1592 = vmatpush1.msra.mxu0 %v2633_v61  ;;  %1723 = vmatprep.subr.mxu1 %v4490_v13 }
 0x36a   : > { %1593 = vmatprep.subr.mxu0 %v2632_v21  ;;  %1724 = vmatpush1.msra.mxu1 %v3154_v40  ;;  %v1965_v40 = vld [vmem:[%s4432_s9 + $0xc0] sm:$0xff] (%p99_p0) }
 0x36b   : > { %1594 = vmatpush1.msra.mxu0 %v2631_v52  ;;  %1725 = vmatprep.subr.mxu1 %v4490_v13 }
 0x36c   : > { %1595 = vmatprep.subr.mxu0 %v2630_v63  ;;  %1726 = vmatpush1.msra.mxu1 %v3149_v39  ;;  %v1982_v39 = vld [vmem:[%s4432_s9 + $0x148] sm:$0xff] (%p99_p0) }
 0x36d   : > { %1596 = vmatpush1.msra.mxu0 %v2629_v22  ;;  %1727 = vmatprep.subr.mxu1 %v4490_v13 }
 0x36e   : > { %1597 = vmatprep.subr.mxu0 %v2628_v51  ;;  %1728 = vmatpush1.msra.mxu1 %v3144_v38  ;;  %v4492_v51 = vsub.s32 0, %v3656_v12  ;;  %v1950_v38 = vld [vmem:[%s4432_s9 + $0x48] sm:$0xff] (%p99_p0) }
 0x36f   : > { %1598 = vmatpush1.msra.mxu0 %v2627_v54  ;;  %1729 = vmatprep.subr.mxu1 %v4490_v13  ;;  %v4493_v54 = vld [vmem:[#allocation6_spill] sm:$0xff] }
 0x370   : > { %1599 = vmatprep.subr.mxu0 %v2626_v23  ;;  %1730 = vmatpush1.msra.mxu1 %v3139_v37  ;;  %v1660_v23 = vrot.slane %v4493_v54, %v4492_v51  ;;  %v1966_v37 = vld [vmem:[%s4432_s9 + $0xc8] sm:$0xff] (%p99_p0) }
 0x371   : > { %1600 = vmatpush1.msra.mxu0 %v2625_v53  ;;  %1731 = vmatprep.subr.mxu1 %v4490_v13 }
 0x372   : > { %1601 = vmatprep.subr.mxu0 %v2624_v5  ;;  %1732 = vmatpush1.msra.mxu1 %v3134_v36  ;;  %v1983_v36 = vld [vmem:[%s4432_s9 + $0x150] sm:$0xff] (%p99_p0) }
 0x373   : > { %1602 = vmatpush1.msra.mxu0 %v2623_v4  ;;  %1733 = vmatprep.subr.mxu1 %v4490_v13 }
 0x374   : > { %1603 = vmatprep.subr.mxu0 %v2622_v17  ;;  %1734 = vmatpush1.msra.mxu1 %v3129_v35  ;;  %v4494_v17 = vsub.s32 1, %v3656_v12  ;;  %v1951_v35 = vld [vmem:[%s4432_s9 + $0x50] sm:$0xff] (%p99_p0) }
 0x375   : > { %1604 = vmatpush1.msra.mxu0 %v2621_v19  ;;  %1735 = vmatprep.subr.mxu1 %v4490_v13 }
 0x376   : > { %1605 = vmatprep.subr.mxu0 %v2620_v47  ;;  %1736 = vmatpush1.msra.mxu1 %v3124_v34  ;;  %v1664_v19 = vrot.slane %v4493_v54, %v4494_v17  ;;  %v1967_v34 = vld [vmem:[%s4432_s9 + $0xd0] sm:$0xff] (%p99_p0)  ;;  %v1964_v54 = vld [vmem:[%s4432_s9 + $0xb8] sm:$0xff] (%p99_p0) }
 0x377   : > { %1606 = vmatpush1.msra.mxu0 %v2619_v18  ;;  %1737 = vmatprep.subr.mxu1 %v4490_v13 }
 0x378   : > { %2643 = vmatmul.mubr.msk.f32.vlgmr.msra.gmra.mxu0 %vm1127_vm7, %v1564_v48  ;;  %1738 = vmatpush1.msra.mxu1 %v3119_v33  ;;  %v1984_v33 = vld [vmem:[%s4432_s9 + $0x158] sm:$0xff] (%p99_p0) }
 0x379   : > { %1645 = vmatprep.mubr.f32.mxu0 %v4490_v13  ;;  %1739 = vmatprep.subr.mxu1 %v4490_v13 }
 0x37a   : > { %1740 = vmatpush1.msra.mxu1 %v3114_v32  ;;  %2743 = vmatprep.subr.mxu0 %v4490_v13  ;;  %v1952_v32 = vld [vmem:[%s4432_s9 + $0x58] sm:$0xff] (%p99_p0) }
 0x37b   : > { %1741 = vmatprep.subr.mxu1 %v4490_v13 }
 0x37c   : > { %2644 = vmatmul.mubr.msk.f32.gmra.mxu0 %vm1127_vm7, %v1563_v55  ;;  %1742 = vmatpush1.msra.mxu1 %v3109_v31  ;;  %v1968_v31 = vld [vmem:[%s4432_s9 + $0xd8] sm:$0xff] (%p99_p0) }
 0x37d   : > { %1743 = vmatprep.subr.mxu1 %v4490_v13  ;;  %2747 = vmatprep.mubr.msk.f32.mxu0 %vm2861_vm11, %v4490_v13 }
 0x37e   : > { %1744 = vmatpush1.msra.mxu1 %v3104_v30  ;;  %v1985_v30 = vld [vmem:[%s4432_s9 + $0x160] sm:$0xff] (%p99_p0) }
 0x37f   : > { %1745 = vmatprep.subr.mxu1 %v4490_v13 }
 0x380   : > { %1746 = vmatpush1.msra.mxu1 %v3099_v29  ;;  %v1953_v29 = vld [vmem:[%s4432_s9 + $0x60] sm:$0xff] (%p99_p0) }
 0x381   : > { %1747 = vmatprep.subr.mxu1 %v4490_v13 }
 0x382   : > { %1748 = vmatpush1.msra.mxu1 %v3094_v28  ;;  %v1969_v28 = vld [vmem:[%s4432_s9 + $0xe0] sm:$0xff] (%p99_p0) }
 0x383   : > { %1749 = vmatprep.subr.mxu1 %v4490_v13 }
 0x384   : > { %1750 = vmatpush1.msra.mxu1 %v3089_v27  ;;  %v1986_v27 = vld [vmem:[%s4432_s9 + $0x168] sm:$0xff] (%p99_p0) }
 0x385   : > { %1751 = vmatprep.subr.mxu1 %v4490_v13 }
 0x386   : > { %1752 = vmatpush1.msra.mxu1 %v3084_v26  ;;  %v1954_v26 = vld [vmem:[%s4432_s9 + $0x68] sm:$0xff] (%p99_p0) }
 0x387   : > { %1777 = vmatprep.subr.mxu1 %v4490_v13 }
 0x388   : > { %2645 = vmatpush2.msk.msra.mxu1 %vm814_vm1, %v3179_v45  ;;  %v1981_v45 = vld [vmem:[%s4432_s9 + $0x140] sm:$0xff] (%p99_p0) }
 0x389   : > { %1779 = vmatprep.subr.mxu1 %v4490_v13 }
 0x38a   : > { %1780 = vmatpush2.msra.mxu1 %v3174_v44  ;;  %v1949_v44 = vld [vmem:[%s4432_s9 + $0x40] sm:$0xff] (%p99_p0) }
 0x38b   : > { %1781 = vmatprep.subr.mxu1 %v4490_v13 }
 0x38c   : > { %1782 = vmatpush2.msra.mxu1 %v3169_v43  ;;  %v2001_v43 = vunpack.c.l.s4 (%p99_p0), %v2868_v41 }
 0x38d   : > { %1783 = vmatprep.subr.mxu1 %v4490_v13 }
 0x38e   : > { %1784 = vmatpush2.msra.mxu1 %v4491_v6 }
 0x407   : > { %v1292_v20 = vpop.f32.mrf.mxu1 }
 0x409   : > { %v1294_v16 = vpop.f32.mrf.mxu1 }
 0x40a   : > { %v1205_v7 = vpop.f32.mrf.mxu0 }
 0x40b   : > { %v1293_v9 = vadd.f32 %v1292_v20, %v1205_v7 }
 0x40c   : > { %v1207_v24 = vpop.f32.mrf.mxu0  ;;  %v1298_v57 = vpop.f32.mrf.mxu1 }
 0x40d   : > { %v1295_v11 = vadd.f32 %v1294_v16, %v1207_v24 }
 0x40e   : > { %v1300_v62 = vpop.f32.mrf.mxu1 }
 0x410   : > { %v1211_v25 = vpop.f32.mrf.mxu0 }
 0x411   : > { %v1299_v46 = vadd.f32 %v1298_v57, %v1211_v25 }
 0x412   : > { %v1213_v42 = vpop.f32.mrf.mxu0 }
 0x413   : > { %v1301_v60 = vadd.f32 %v1300_v62, %v1213_v42 }
 0x41f   : > { %v1524_v8 = vpop.f32.mrf.mxu1 }
 0x421   : > { %v1526_v14 = vpop.f32.mrf.mxu1 }
 0x422   : > { %v1406_v58 = vpop.f32.mrf.mxu0 }
 0x423   : > { %v1417_v59 = vadd.f32 %v1406_v58, %v1293_v9  ;;  %v1530_v21 = vpop.f32.mrf.mxu1 }
 0x424   : > { %v1408_v1 = vpop.f32.mrf.mxu0 }
 0x425   : > { %v1418_v49 = vadd.f32 %v1408_v1, %v1295_v11  ;;  %v1535_v61 = vadd.f32 %v1524_v8, %v1417_v59  ;;  %v1532_v47 = vpop.f32.mrf.mxu1 }
 0x426   : > { %v1412_v10 = vpop.f32.mrf.mxu0 }
 0x427   : > { %v1419_v15 = vadd.f32 %v1412_v10, %v1299_v46  ;;  %v1536_v53 = vadd.f32 %v1526_v14, %v1418_v49 }
 0x428   : > { %v1414_v50 = vpop.f32.mrf.mxu0 }
 0x429   : > { %v1420_v63 = vadd.f32 %v1414_v50, %v1301_v60  ;;  %v1537_v56 = vadd.f32 %v1530_v21, %v1419_v15 }
 0x42b   : > { %v1538_v6 = vadd.f32 %v1532_v47, %v1420_v63 }
 0x438   : > { %v1641_v52 = vpop.f32.mrf.mxu0 }
 0x439   : > { %v1652_v22 = vadd.f32 %v1641_v52, %v1535_v61 }
 0x43a   : > { %v1643_v5 = vpop.f32.mrf.mxu0 }
 0x43b   : > { %v1653_v4 = vadd.f32 %v1643_v5, %v1536_v53  ;;  %v1667_v55 = vadd.f32 %v1660_v23, %v1652_v22  ;;  %v4495_v5 = vld [vmem:[#allocation28_spill] sm:$0xff] }
 0x43c   : > { %v1647_v18 = vpop.f32.mrf.mxu0 }
 0x43d   : > { %v1654_v48 = vadd.f32 %v1647_v18, %v1537_v56  ;;  %v1668_v24 = vadd.f32 %v1664_v19, %v1653_v4  ;;  %v1675_v16 = vrot.slane %v1667_v55, 1 }
 0x43e   : > { %v1649_v7 = vpop.f32.mrf.mxu0 }
 0x43f   : > { %v1669_v20 = vadd.f32 %v1660_v23, %v1654_v48  ;;  %v1655_v25 = vadd.f32 %v1649_v7, %v1538_v6  ;;  %v1678_v58 = vrot.slane %v1668_v24, 1 }
 0x441   : > { %v1676_v42 = vrot.slane %v1669_v20, 1  ;;  %v1670_v57 = vadd.f32 %v1664_v19, %v1655_v25 }
 0x443   : > { %v1679_v62 = vrot.slane %v1670_v57, 1  ;;  %v1677_v1 = vsel %vm814_vm1, %v1675_v16, %v1676_v42  ;;  %v1687_v11 = vmax.f32 %v1669_v20, %v1676_v42 }
 0x444   : > { %v1685_v8 = vmax.f32 %v1667_v55, %v1677_v1 }
 0x445   : > { %v1680_v9 = vsel %vm814_vm1, %v1678_v58, %v1679_v62  ;;  %v1688_v59 = vmax.f32 %v1670_v57, %v1679_v62  ;;  %vm1897_vm1 = vcmask 523264  }
 0x446   : > { %1693 = vrot.lane.b32.xlu0 %v1685_v8, %s2860_s28  ;;  %v1686_v10 = vmax.f32 %v1668_v24, %v1680_v9 }
 0x448   : > { %1695 = vrot.lane.b32.xlu1 %v1686_v10, %s2860_s28 }
 0x44a   : > { %1697 = vrot.lane.b32.xlu0 %v1687_v11, %s2860_s28 }
 0x44c   : > { %1699 = vrot.lane.b32.xlu1 %v1688_v59, %s2860_s28  ;;  %s2862_s28 = smov 32  }
 0x4b8   : > { %v1694_v14 = vpop.permute.xlu0 %1693 }
 0x4ba   : > { %v1696_v46 = vpop.permute.xlu1 %1695 }
 0x4bb   : > { %v1701_v49 = vsel %vm869_vm2, %v1694_v14, %v1696_v46  ;;  %v1708_v50 = vmax.f32 %v1686_v10, %v1696_v46  ;;  %v1972_v14 = vld [vmem:[%s4432_s9 + $0xf8] sm:$0xff] (%p99_p0) }
 0x4bc   : > { %v1707_v60 = vmax.f32 %v1685_v8, %v1701_v49  ;;  %v1698_v15 = vpop.permute.xlu0 %1697  ;;  %v1956_v46 = vld [vmem:[%s4432_s9 + $0x78] sm:$0xff] (%p99_p0) }
 0x4bd   : > { %2646 = vmatprep.mubr.msk.f32.mxu1 %vm1711_vm10, %v1708_v50  ;;  %v1988_v49 = vld [vmem:[%s4432_s9 + $0x178] sm:$0xff] (%p99_p0)  ;;  %v2867_v50 = vmov (%p99_p0), 0.0  }
 0x4be   : > { %v1700_v61 = vpop.permute.xlu1 %1699  ;;  %1786 = vmatmul.mubr.f32.vlgmr.msra.gmra.mxu1 %v1707_v60  ;;  %2092 = vmatprep.subr.mxu1 (%p99_p0), %v2867_v50  ;;  %v1971_v60 = vld [vmem:[%s4432_s9 + $0xf0] sm:$0xff] (%p99_p0) }
 0x4bf   : > { %v1702_v21 = vsel %vm869_vm2, %v1698_v15, %v1700_v61  ;;  %v1710_v52 = vmax.f32 %v1688_v59, %v1700_v61  ;;  %2093 = vmatpush1.msra.mxu1 (%p99_p0), %v1988_v49  ;;  %v1948_v15 = vld [vmem:[%s4432_s9 + $0x38] sm:$0xff] (%p99_p0)  ;;  %v2171_v49 = vld [vmem:[%s4434_s11 + $0x48] sm:$0xff] (%p99_p0) }
 0x4c0   : > { %v1709_v63 = vmax.f32 %v1687_v11, %v1702_v21  ;;  %v4496_v11 = vlaneseq  ;;  %2094 = vmatprep.subr.mxu1 (%p99_p0), %v2867_v50  ;;  %v1980_v61 = vld [vmem:[%s4432_s9 + $0x138] sm:$0xff] (%p99_p0)  ;;  %v1963_v21 = vld [vmem:[%s4432_s9 + $0xb0] sm:$0xff] (%p99_p0) }
 0x4c1   : > { %2647 = vmatprep.mubr.msk.f32.mxu1 %vm1711_vm10, %v1710_v52  ;;  %2095 = vmatpush1.msra.mxu1 (%p99_p0), %v1987_v2  ;;  %v2002_v52 = vunpack.c.0.s8 (%p99_p0), %v2001_v43  ;;  %v2168_v2 = vld [vmem:[%s4434_s11 + $0x30] sm:$0xff] (%p99_p0)  ;;  %v2652_v43 = vld [vmem:[%s4433_s10] ss:$0 sm:$0xff] (%p99_p0) }
 0x4c2   : > { %1791 = vmatmul.mubr.f32.gmra.mxu1 %v1709_v63  ;;  %vm1929_vm2 = vcmp.lt.s32.totalorder %v4496_v11, 400  ;;  %2096 = vmatprep.subr.mxu1 (%p99_p0), %v2867_v50  ;;  %v1947_v63 = vld [vmem:[%s4432_s9 + $0x30] sm:$0xff] (%p99_p0)  ;;  %v2175_v11 = vld [vmem:[%s4434_s11 + $0x68] sm:$0xff] (%p99_p0) }
 0x4c3   :  { %2097 = vmatpush1.msra.mxu1 (%p99_p0), %v1986_v27  ;;  %v2165_v27 = vld [vmem:[%s4434_s11 + $0x18] sm:$0xff] (%p99_p0) }
 0x4c4   :  { %2098 = vmatprep.subr.mxu1 (%p99_p0), %v2867_v50 }
 0x4c5   :  { %2099 = vmatpush1.msra.mxu1 (%p99_p0), %v1985_v30  ;;  %v2162_v30 = vld [vmem:[%s4434_s11] sm:$0xff] (%p99_p0) }
 0x4c6   :  { %2100 = vmatprep.subr.mxu1 (%p99_p0), %v2867_v50 }
 0x4c7   :  { %2101 = vmatpush1.msra.mxu1 (%p99_p0), %v1984_v33  ;;  %v2266_v33 = vld [vmem:[%s4436_s13 + $0x40] sm:$0xff] (%p99_p0) }
 0x4c8   :  { %2102 = vmatprep.subr.mxu1 (%p99_p0), %v2867_v50 }
 0x4c9   :  { %2103 = vmatpush1.msra.mxu1 (%p99_p0), %v1983_v36  ;;  %v2263_v36 = vld [vmem:[%s4436_s13 + $0x28] sm:$0xff] (%p99_p0) }
 0x4ca   :  { %2104 = vmatprep.subr.mxu1 (%p99_p0), %v2867_v50 }
 0x4cb   :  { %2105 = vmatpush1.msra.mxu1 (%p99_p0), %v1982_v39  ;;  %v2260_v39 = vld [vmem:[%s4436_s13 + $0x10] sm:$0xff] (%p99_p0) }
 0x4cc   :  { %2106 = vmatprep.subr.mxu1 (%p99_p0), %v2867_v50 }
 0x4cd   :  { %2107 = vmatpush1.msra.mxu1 (%p99_p0), %v1981_v45 }
 0x4ce   :  { %2108 = vmatprep.subr.mxu1 (%p99_p0), %v2867_v50 }
 0x4cf   :  { %2109 = vmatpush1.msra.mxu1 (%p99_p0), %v1980_v61 }
 0x4d0   :  { %2110 = vmatprep.subr.mxu1 (%p99_p0), %v2867_v50 }
 0x57e   : > { %v1787_v22 = vpop.f32.mrf.mxu1 }
 0x580   : > { %v1789_v51 = vpop.f32.mrf.mxu1 }
 0x581   :  { %v1962_v51 = vld [vmem:[%s4432_s9 + $0xa8] sm:$0xff] (%p99_p0) }
 0x582   : > { %v1792_v23 = vpop.f32.mrf.mxu1 }
 0x583   : > { %2744 = vmatpush3.msk.msra.mxu0 %vm1800_vm12, %v1792_v23  ;;  %v1946_v23 = vld [vmem:[%s4432_s9 + $0x28] sm:$0xff] (%p99_p0) }
 0x584   : > { %v1794_v53 = vpop.f32.mrf.mxu1  ;;  %2745 = vmatprep.subr.mxu0 %v4490_v13  ;;  %v2866_v13 = vmov 1966171168  }
 0x585   : > { %2746 = vmatpush3.msra.mxu0 %v1787_v22  ;;  %v1905_v55 = vunpack.c.l.s4 %v2866_v13  ;;  %v1979_v22 = vld [vmem:[%s4432_s9 + $0x130] sm:$0xff] (%p99_p0)  ;;  %v1978_v53 = vld [vmem:[%s4432_s9 + $0x128] sm:$0xff] (%p99_p0)  ;;  %v1976_v13 = vld [vmem:[%s4432_s9 + $0x118] sm:$0xff] (%p99_p0) }
 0x586   : > { %2748 = vmatmul.mubr.msk.f32.vlgmr.msra.gmra.mxu0 %vm1796_vm13, %v4495_v5  ;;  %2669 = vmatprep.subr.mxu0 (%p99_p0), %v1972_v14  ;;  %v1961_v5 = vld [vmem:[%s4432_s9 + $0xa0] sm:$0xff] (%p99_p0)  ;;  %v2173_v14 = vld [vmem:[%s4434_s11 + $0x58] sm:$0xff] (%p99_p0) }
 0x587   : > { %v1906_v7 = vunpack.c.0.s8 %v1905_v55  ;;  %2670 = vmatpush3.msra.mxu0 (%p99_p0), %v1956_v46  ;;  %2111 = vmatpush1.msra.mxu1 (%p99_p0), %v1979_v22  ;;  %v1959_v55 = vld [vmem:[%s4432_s9 + $0x90] sm:$0xff] (%p99_p0) }
 0x588   :  { %2671 = vmatprep.subr.mxu0 (%p99_p0), %v1971_v60  ;;  %2112 = vmatprep.subr.mxu1 (%p99_p0), %v2867_v50  ;;  %v2172_v46 = vld [vmem:[%s4434_s11 + $0x50] sm:$0xff] (%p99_p0)  ;;  %v2170_v60 = vld [vmem:[%s4434_s11 + $0x40] sm:$0xff] (%p99_p0) }
 0x589   : > { %v1909_v25 = vsub.s32 %v1906_v7, %v3656_v12  ;;  %2672 = vmatpush3.msra.mxu0 (%p99_p0), %v1955_v0  ;;  %2113 = vmatpush1.msra.mxu1 (%p99_p0), %v1978_v53  ;;  %v1975_v7 = vld [vmem:[%s4432_s9 + $0x110] sm:$0xff] (%p99_p0)  ;;  %v2169_v0 = vld [vmem:[%s4434_s11 + $0x38] sm:$0xff] (%p99_p0)  ;;  %v2656_v53 = vld [vmem:[%s4437_s14] ss:$0 sm:$0xff] (%p99_p0) }
 0x58a   :  { %2673 = vmatprep.subr.mxu0 (%p99_p0), %v1970_v3  ;;  %2114 = vmatprep.subr.mxu1 (%p99_p0), %v2867_v50  ;;  %v2167_v3 = vld [vmem:[%s4434_s11 + $0x28] sm:$0xff] (%p99_p0) }
 0x58b   :  { %2674 = vmatpush3.msra.mxu0 (%p99_p0), %v1954_v26  ;;  %v2166_v26 = vld [vmem:[%s4434_s11 + $0x20] sm:$0xff] (%p99_p0) }
 0x58c   :  { %2675 = vmatprep.subr.mxu0 (%p99_p0), %v1969_v28  ;;  %v2164_v28 = vld [vmem:[%s4434_s11 + $0x10] sm:$0xff] (%p99_p0) }
 0x58d   :  { %2676 = vmatpush3.msra.mxu0 (%p99_p0), %v1953_v29  ;;  %v2163_v29 = vld [vmem:[%s4434_s11 + $0x8] sm:$0xff] (%p99_p0) }
 0x58e   :  { %2677 = vmatprep.subr.mxu0 (%p99_p0), %v1968_v31  ;;  %v2268_v31 = vld [vmem:[%s4436_s13 + $0x50] sm:$0xf] (%p99_p0) }
 0x58f   :  { %2678 = vmatpush3.msra.mxu0 (%p99_p0), %v1952_v32  ;;  %v2267_v32 = vld [vmem:[%s4436_s13 + $0x48] sm:$0xff] (%p99_p0) }
 0x590   :  { %2679 = vmatprep.subr.mxu0 (%p99_p0), %v1967_v34  ;;  %v2265_v34 = vld [vmem:[%s4436_s13 + $0x38] sm:$0xff] (%p99_p0) }
 0x591   :  { %2680 = vmatpush3.msra.mxu0 (%p99_p0), %v1951_v35  ;;  %v2264_v35 = vld [vmem:[%s4436_s13 + $0x30] sm:$0xff] (%p99_p0) }
 0x592   :  { %2681 = vmatprep.subr.mxu0 (%p99_p0), %v1966_v37  ;;  %v2262_v37 = vld [vmem:[%s4436_s13 + $0x20] sm:$0xff] (%p99_p0) }
 0x593   :  { %2682 = vmatpush3.msra.mxu0 (%p99_p0), %v1950_v38  ;;  %v2261_v38 = vld [vmem:[%s4436_s13 + $0x18] sm:$0xff] (%p99_p0) }
 0x594   :  { %2683 = vmatprep.subr.mxu0 (%p99_p0), %v1965_v40 }
 0x595   :  { %2684 = vmatpush3.msra.mxu0 (%p99_p0), %v1949_v44 }
 0x596   :  { %2685 = vmatprep.subr.mxu0 (%p99_p0), %v1964_v54 }
 0x597   :  { %2686 = vmatpush3.msra.mxu0 (%p99_p0), %v1948_v15 }
 0x598   :  { %2687 = vmatprep.subr.mxu0 (%p99_p0), %v1963_v21  ;;  %v2259_v21 = vld [vmem:[%s4436_s13 + $0x8] sm:$0xff] (%p99_p0) }
 0x599   :  { %2688 = vmatpush3.msra.mxu0 (%p99_p0), %v1947_v63  ;;  %v2654_v63 = vld [vmem:[%s4435_s12] ss:$0 sm:$0xff] (%p99_p0) }
 0x59a   :  { %2689 = vmatprep.subr.mxu0 (%p99_p0), %v1962_v51 }
 0x59b   :  { %2690 = vmatpush3.msra.mxu0 (%p99_p0), %v1946_v23 }
 0x59c   :  { %2691 = vmatprep.subr.mxu0 (%p99_p0), %v1961_v5 }
 0x646   : > { %v1870_v4 = vpop.f32.mrf.mxu0 }
 0x647   : > { %v1879_v17 = vrot.slane %v1870_v4, 2  ;;  %v1875_v19 = vrot.slane %v1870_v4, 1  ;;  %v1887_v47 = vrot.slane %v1870_v4, 4  ;;  %v1883_v18 = vrot.slane %v1870_v4, 3 }
 0x648   : > { %v2749_v56 = vpop.f32.mrf.mxu0 }
 0x649   : > { %1880 = vrot.lane.b32.xlu1 %v1879_v17, %s2862_s28  ;;  %1876 = vrot.lane.b32.xlu0 %v1875_v19, %s2863_s20  ;;  %v1945_v17 = vld [vmem:[%s4432_s9 + $0x20] sm:$0xff] (%p99_p0) }
 0x64a   :  { %v1977_v19 = vld [vmem:[%s4432_s9 + $0x120] sm:$0xff] (%p99_p0)  ;;  %2692 = vmatpush3.msra.mxu0 (%p99_p0), %v1945_v17 }
 0x64b   :  { %2115 = vmatpush1.msra.mxu1 (%p99_p0), %v1977_v19 }
 0x64c   :  { %2116 = vmatprep.subr.mxu1 (%p99_p0), %v2867_v50 }
 0x64d   : > { %1888 = vrot.lane.b32.xlu1 %v1887_v47, %s2864_s21  ;;  %1884 = vrot.lane.b32.xlu0 %v1883_v18, %s2865_s4  ;;  %v1960_v47 = vld [vmem:[%s4432_s9 + $0x98] sm:$0xff] (%p99_p0) }
 0x64e   :  { %2693 = vmatprep.subr.mxu0 (%p99_p0), %v1960_v47  ;;  %2117 = vmatpush1.msra.mxu1 (%p99_p0), %v1976_v13 }
 0x64f   :  { %2118 = vmatprep.subr.mxu1 (%p99_p0), %v2867_v50 }
 0x650   :  { %2119 = vmatpush1.msra.mxu1 (%p99_p0), %v1975_v7 }
 0x651   :  { %2120 = vmatprep.subr.mxu1 (%p99_p0), %v2867_v50 }
 0x6bb   : > { %v1881_v48 = vpop.permute.xlu1 %1880  ;;  %v1877_v6 = vpop.permute.xlu0 %1876 }
 0x6bc   : > { %v1894_v24 = vsel %vm1893_vm14, %v1877_v6, %v1881_v48  ;;  %v1892_v42 = vsel %vm1891_vm15, %v1870_v4, %v1877_v6  ;;  %v2005_v4 = vsub.s32 (%p99_p0), %v2002_v52, %v3656_v12  ;;  %v1944_v12 = vld [vmem:[%s4432_s9 + $0x18] sm:$0xff] (%p99_p0)  ;;  %v1943_v6 = vld [vmem:[%s4432_s9 + $0x10] sm:$0xff] (%p99_p0)  ;;  %v2258_v52 = vld [vmem:[%s4436_s13] sm:$0xff] (%p99_p0) }
 0x6bd   :  { %2694 = vmatpush3.msra.mxu0 (%p99_p0), %v1944_v12 }
 0x6be   :  { %2695 = vmatprep.subr.mxu0 (%p99_p0), %v1959_v55 }
 0x6bf   : > { %v1889_v20 = vpop.permute.xlu1 %1888  ;;  %v1885_v16 = vpop.permute.xlu0 %1884  ;;  %2696 = vmatpush3.msra.mxu0 (%p99_p0), %v1943_v6 }
 0x6c0   : > { %v1896_v57 = vsel %vm1895_vm0, %v1894_v24, %v1885_v16  ;;  %v1898_v58 = vsel %vm1897_vm1, %v1885_v16, %v1889_v20  ;;  %v1958_v24 = vld [vmem:[%s4432_s9 + $0x88] sm:$0xff] (%p99_p0) }
 0x6c1   : > { %v1902_v62 = vcombine.low %v1892_v42, %v1896_v57  ;;  %v1903_v1 = vcombine.low %v1898_v58, %v1889_v20  ;;  %v1974_v16 = vld [vmem:[%s4432_s9 + $0x108] sm:$0xff] (%p99_p0)  ;;  %v1957_v42 = vld [vmem:[%s4432_s9 + $0x80] sm:$0xff] (%p99_p0)  ;;  %2697 = vmatprep.subr.mxu0 (%p99_p0), %v1958_v24 }
 0x6c2   :  { %v1941_v58 = vld [vmem:[%s4432_s9] sm:$0xff] (%p99_p0)  ;;  %2121 = vmatpush1.msra.mxu1 (%p99_p0), %v1974_v16 }
 0x6c3   : > { %v1910_v8 = vrot.slane %v1902_v62, %v1909_v25  ;;  %v1917_v9 = vrot.slane %v1903_v1, %v1909_v25  ;;  %v1973_v62 = vld [vmem:[%s4432_s9 + $0x100] sm:$0xff] (%p99_p0)  ;;  %2122 = vmatprep.subr.mxu1 (%p99_p0), %v2867_v50 }
 0x6c4   :  { %2123 = vmatpush1.msra.mxu1 (%p99_p0), %v1973_v62 }
 0x6c5   : > { %v1918_v10 = vcombine.low %v1910_v8, %v1917_v9  ;;  %101 = sbr.rel (!%p99_p0) target bundleno = 20 (0x14), region = 101  ;;  %v1990_v8 = vld [vmem:[%s4432_s9 + $0x188] sm:$0xff] (%p99_p0)  ;;  %v2176_v9 = vld [vmem:[%s4434_s11 + $0x70] sm:$0xff] (%p99_p0)  ;;  %2152 = vmatprep.subr.mxu1 (%p99_p0), %v2867_v50 }
 0x6c6   :  { %2153 = vmatpush2.msra.mxu1 (%p99_p0), %v1990_v8 }
 0x6c7   : > { %v1925_v59 = vrot.slane %v1918_v10, %v1909_v25  ;;  %v1942_v25 = vld [vmem:[%s4432_s9 + $0x8] sm:$0xff] (%p99_p0)  ;;  %v1989_v10 = vld [vmem:[%s4432_s9 + $0x180] sm:$0xff] (%p99_p0)  ;;  %2154 = vmatprep.subr.mxu1 (%p99_p0), %v2867_v50  ;;  %s2870_s9 = smov (%p99_p0), [#allocation3]  }
 0x6c8   :  { %2698 = vmatpush3.msra.mxu0 (%p99_p0), %v1942_v25  ;;  %2155 = vmatpush2.msra.mxu1 (%p99_p0), %v1989_v10  ;;  %s2362_s5 = sshll.u32 (%p99_p0), %s2870_s9, 4  ;;  %s2363_s5 = int_to_ptr.vmem [resolvable:$true] %s2362_s5 }
 0x6c9   : > { %1939 = vst.msk [vmem:[%s1938_s24] ss:$2 sm:$0xf] %vm1929_vm2, %v1925_v59  ;;  %2699 = vmatprep.subr.mxu0 (%p99_p0), %v1957_v42  ;;  %v2174_v59 = vld [vmem:[%s4434_s11 + $0x60] sm:$0xff] (%p99_p0)  ;;  %2783 = vmatprep.subr.mxu1 (%p99_p0), %v2867_v50  ;;  %s2829_s13 = scalar_lea.vmem (%p99_p0), %s2363_s5, 32  ;;  %p2834_p2 = scmp.lt.s32.totalorder (%p99_p0), %s2363_s5, %s2363_s5 }
 0x6ca   :  { %2700 = vmatpush3.msra.mxu0 %v1941_v58  ;;  %p2830_p1 = scmp.ne.s32.totalorder %s2363_s5, %s2829_s13  ;;  %p2835_p3 = scmp.lt.s32.totalorder %s2829_s13, %s2829_s13 }
 0x6cb   :  { %2750 = vmatprep.subr.mxu0 %v2867_v50 }
 0x6cc   :  { %p2836_p4 = por %p2835_p3, %p2834_p2 }
 0x6ce   :  { %p2837_p5 = pnand %p2836_p4, %p2830_p1 }
 0x6d0   :  { %v1940_v56 = vld [vmem:[#allocation2] sm:$0xff] }
 0x6d1   :  { %v1999_v18 = vcombine.high %v1940_v56, %v1940_v56  ;;  %v2006_v48 = vrot.slane %v1940_v56, %v2005_v4 }
 0x6d3   :  { %v2013_v20 = vrot.slane %v1999_v18, %v2005_v4  ;;  %v2014_v57 = vcombine.high %v2006_v48, %v2006_v48 }
 0x6d5   :  { %v2015_v1 = vcombine.high %v2013_v20, %v2013_v20  ;;  %2086 = vmatprep.mubr.f32.mxu0 %v2014_v57 }
 0x6d6   :  { %2087 = vmatmul.mubr.f32.vlgmr.msra.gmra.mxu0 %v2006_v48 }
 0x6d7   :  { %2653 = vmatprep.mubr.msk.f32.mxu1 %vm2019_vm3, %v2015_v1  ;;  %2751 = vmatpush3.msra.mxu0 %v2176_v9 }
 0x6d8   :  { %2752 = vmatprep.subr.mxu0 %v2867_v50  ;;  %2157 = vmatmul.mubr.f32.vlgmr.msra.gmra.mxu1 %v2013_v20 }
 0x6d9   :  { %2753 = vmatpush3.msra.mxu0 %v2175_v11  ;;  %2780 = vmatprep.mubr.msk.f32.mxu0 %vm2869_vm4, %v2867_v50 }
 0x6da   :  { %2754 = vmatprep.subr.mxu0 %v2867_v50  ;;  %2805 = vmatprep.mubr.msk.f32.mxu1 %vm2869_vm4, %v2867_v50 }
 0x6db   :  { %2755 = vmatpush3.msra.mxu0 %v2174_v59  ;;  %2784 = vmatpush3.msk.msra.mxu1 %vm1132_vm5, %v2268_v31  ;;  %vm2184_vm5 = vcmask 982016  }
 0x6dc   :  { %2756 = vmatprep.subr.mxu0 %v2867_v50  ;;  %2785 = vmatprep.subr.mxu1 %v2867_v50 }
 0x6dd   :  { %2757 = vmatpush3.msra.mxu0 %v2173_v14  ;;  %2786 = vmatpush3.msra.mxu1 %v2267_v32 }
 0x6de   :  { %2758 = vmatprep.subr.mxu0 %v2867_v50  ;;  %2787 = vmatprep.subr.mxu1 %v2867_v50 }
 0x6df   :  { %2759 = vmatpush3.msra.mxu0 %v2172_v46  ;;  %2788 = vmatpush3.msra.mxu1 %v2266_v33 }
 0x6e0   :  { %2760 = vmatprep.subr.mxu0 %v2867_v50  ;;  %2789 = vmatprep.subr.mxu1 %v2867_v50 }
 0x6e1   :  { %2761 = vmatpush3.msra.mxu0 %v2171_v49  ;;  %2790 = vmatpush3.msra.mxu1 %v2265_v34 }
 0x6e2   :  { %2762 = vmatprep.subr.mxu0 %v2867_v50  ;;  %2791 = vmatprep.subr.mxu1 %v2867_v50 }
 0x6e3   :  { %2763 = vmatpush3.msra.mxu0 %v2170_v60  ;;  %2792 = vmatpush3.msra.mxu1 %v2264_v35 }
 0x6e4   :  { %2764 = vmatprep.subr.mxu0 %v2867_v50  ;;  %2793 = vmatprep.subr.mxu1 %v2867_v50 }
 0x6e5   :  { %2765 = vmatpush3.msra.mxu0 %v2169_v0  ;;  %2794 = vmatpush3.msra.mxu1 %v2263_v36 }
 0x6e6   :  { %2766 = vmatprep.subr.mxu0 %v2867_v50  ;;  %2795 = vmatprep.subr.mxu1 %v2867_v50 }
 0x6e7   :  { %2767 = vmatpush3.msra.mxu0 %v2168_v2  ;;  %2796 = vmatpush3.msra.mxu1 %v2262_v37 }
 0x6e8   :  { %2768 = vmatprep.subr.mxu0 %v2867_v50  ;;  %2797 = vmatprep.subr.mxu1 %v2867_v50 }
 0x6e9   :  { %2769 = vmatpush3.msra.mxu0 %v2167_v3  ;;  %2798 = vmatpush3.msra.mxu1 %v2261_v38 }
 0x6ea   :  { %2770 = vmatprep.subr.mxu0 %v2867_v50  ;;  %2799 = vmatprep.subr.mxu1 %v2867_v50 }
 0x6eb   :  { %2771 = vmatpush3.msra.mxu0 %v2166_v26  ;;  %2800 = vmatpush3.msra.mxu1 %v2260_v39 }
 0x6ec   :  { %2772 = vmatprep.subr.mxu0 %v2867_v50  ;;  %2801 = vmatprep.subr.mxu1 %v2867_v50 }
 0x6ed   :  { %2773 = vmatpush3.msra.mxu0 %v2165_v27  ;;  %2802 = vmatpush3.msra.mxu1 %v2259_v21 }
 0x6ee   :  { %2774 = vmatprep.subr.mxu0 %v2867_v50  ;;  %2803 = vmatprep.subr.mxu1 %v2867_v50 }
 0x6ef   :  { %2775 = vmatpush3.msra.mxu0 %v2164_v28  ;;  %2804 = vmatpush3.msra.mxu1 %v2258_v52 }
 0x6f0   :  { %2776 = vmatprep.subr.mxu0 %v2867_v50 }
 0x6f1   :  { %2777 = vmatpush3.msra.mxu0 %v2163_v29 }
 0x6f2   :  { %2778 = vmatprep.subr.mxu0 %v2867_v50 }
 0x6f3   :  { %2779 = vmatpush3.msra.mxu0 %v2162_v30 }
 0x796   :  { %v2701_v40 = vpop.f32.mrf.mxu0 }
 0x798   :  { %v2702_v41 = vpop.f32.mrf.mxu0  ;;  %v2158_v54 = vpop.f32.mrf.mxu1 }
 0x799   :  { %v2703_v44 = vadd.f32 %v2702_v41, %v2701_v40 }
 0x79a   :  { %v2160_v61 = vpop.f32.mrf.mxu1 }
 0x79b   :  { %v2089_v45 = vadd.f32 %v2703_v44, %v2652_v43 }
 0x79d   :  { %v2159_v15 = vadd.f32 %v2158_v54, %v2089_v45 }
 0x79f   :  { %2781 = vmatmul.mubr.msk.f32.vlgmr.msra.gmra.mxu0 %vm2184_vm5, %v2159_v15 }
 0x85f   :  { %v2254_v22 = vpop.f32.mrf.mxu0 }
 0x860   :  { %v2255_v51 = vadd.f32 %v2654_v63, %v2254_v22 }
 0x861   :  { %v2782_v23 = vpop.f32.mrf.mxu0 }
 0x862   :  { %2806 = vmatmul.mubr.msk.f32.vlgmr.msra.gmra.mxu1 %vm1127_vm7, %v2255_v51 }
 0x922   :  { %v2350_v50 = vpop.f32.mrf.mxu1 }
 0x923   :  { %v2351_v5 = vadd.f32 %v2656_v53, %v2350_v50 }
 0x924   :  { %v2807_v4 = vpop.f32.mrf.mxu1 }
 0x925   :  { %2355 = vst.msk [vmem:[#allocation3] sm:$0x3] %vm2354_vm6, %v2351_v5 }
 0x926   :  { %2840 = shalt.err (!%p2837_p5)
}
 0x927   :  { %2365 = dma.vmem_to_hbm [thread:$0]  %s2363_s5, 32, %s4438_s15, [#allocation4]  }
 0x928   :  { %2853 = dma.done.wait [#allocation4], 32  }
 0x929   :  { %2854 = vsyncadd [#allocation4], 4294967264 }
 0x92a   :  { %2369 = vsyncpa [#allocation4], 1 }

</bundles_post_ra>
